<compile_context>
chip_gen: v6e
topology: v6e:2x2x1
jax: 0.10.0
libtpu: 0.0.40
codegen_flags: <defaults>
</compile_context>

<pallas_src>
import functools

import jax
import jax.numpy as jnp
from jax import lax
from jax.experimental import pallas as pl
from jax.experimental.pallas import tpu as pltpu

# Finite "minus infinity": avoids inf-inf = NaN if a row were ever fully masked.
_MASK_VALUE = -1e30


def _pick_tile(n, candidates):
    """Largest candidate that evenly divides n, else n itself (single tile)."""
    for c in candidates:
        if n % c == 0:
            return c
    return n


# ---------------------------------------------------------------------------
# Kernel A: fused QKV projection over (B*T, C) rows.
#   qkv = x @ w_attn + b_attn   (bf16/f32 MXU operands, f32 accumulation)
#   q is pre-scaled by head_dim**-0.5 here (O(T*C) work instead of O(H*T*T)).
# ---------------------------------------------------------------------------
def _qkv_proj_kernel(x_ref, w_ref, b_ref, k_ref, q_ref, v_ref, *, n_embd, scale):
    C = n_embd
    qkv = jnp.dot(x_ref[...], w_ref[...],
                  preferred_element_type=jnp.float32) + b_ref[...]      # (Rt, 3C) f32
    # PyTorch order: k, q, v = attn(x).split(n_embd, dim=-1)
    k_ref[...] = qkv[:, :C].astype(k_ref.dtype)
    q_ref[...] = (qkv[:, C:2 * C] * scale).astype(q_ref.dtype)
    v_ref[...] = qkv[:, 2 * C:].astype(v_ref.dtype)


# ---------------------------------------------------------------------------
# Kernel B: flash-style causal attention + output projection.
# grid = (B, num_q_tiles, num_kv_tiles), kv axis innermost & "arbitrary".
# ---------------------------------------------------------------------------
def _flash_attn_proj_kernel(q_ref, k_ref, v_ref, wp_ref, bp_ref, o_ref,
                            m_ref, l_ref, acc_ref, *,
                            n_heads, q_tile, compute_dtype, approx_recip):
    qi = pl.program_id(1)
    kj = pl.program_id(2)
    H = n_heads
    Tt = q_tile
    C = q_ref.shape[-1]
    Dh = C // H

    @pl.when(kj == 0)
    def _init():
        m_ref[...] = jnp.full_like(m_ref, _MASK_VALUE)
        l_ref[...] = jnp.zeros_like(l_ref)
        acc_ref[...] = jnp.zeros_like(acc_ref)

    # Causal tile skip: tiles strictly above the diagonal contribute nothing.
    @pl.when(kj <= qi)
    def _update():
        q = q_ref[0]                                  # (Tt, C), scale folded in
        k = k_ref[0]
        v = v_ref[0]
        rows = qi * Tt + lax.broadcasted_iota(jnp.int32, (Tt, Tt), 0)
        cols = kj * Tt + lax.broadcasted_iota(jnp.int32, (Tt, Tt), 1)
        causal = rows >= cols                         # shared by all heads

        for h in range(H):                            # static unroll, static Dh slices
            q_h = q[:, h * Dh:(h + 1) * Dh]           # (Tt, Dh)
            k_h = k[:, h * Dh:(h + 1) * Dh]           # (Tt, Dh)
            v_h = v[:, h * Dh:(h + 1) * Dh]           # (Tt, Dh)
            # s = q_h @ k_h.T without an explicit transpose (MXU NT matmul).
            s = lax.dot_general(q_h, k_h, (((1,), (1,)), ((), ())),
                                preferred_element_type=jnp.float32)     # (Tt, Tt)
            s = jnp.where(causal, s, _MASK_VALUE)

            m_prev = m_ref[h]                                           # (Tt, 1)
            m_new = jnp.maximum(m_prev, jnp.max(s, axis=-1, keepdims=True))
            alpha = jnp.exp(m_prev - m_new)                             # (Tt, 1)
            p = jnp.exp(s - m_new)                                      # (Tt, Tt) f32
            l_ref[h] = alpha * l_ref[h] + jnp.sum(p, axis=-1, keepdims=True)
            pv = jnp.dot(p.astype(compute_dtype), v_h,
                         preferred_element_type=jnp.float32)            # (Tt, Dh)
            acc_ref[h] = alpha * acc_ref[h] + pv
            m_ref[h] = m_new

    # Diagonal tile == last contributing kv tile for this q tile:
    # normalize, merge heads (lane-dense concat), apply the out projection.
    @pl.when(kj == qi)
    def _finalize():
        outs = []
        for h in range(H):
            inv_l = pl.reciprocal(l_ref[h], approx=approx_recip)        # (Tt, 1)
            outs.append(acc_ref[h] * inv_l)                             # (Tt, Dh)
        attn = jnp.concatenate(outs, axis=-1).astype(compute_dtype)     # (Tt, C)
        # Dropout (p=0, eval) is identity, then output projection.
        y = jnp.dot(attn, wp_ref[...],
                    preferred_element_type=jnp.float32) + bp_ref[...]
        o_ref[0] = y.astype(o_ref.dtype)


@functools.partial(jax.jit, static_argnames=("n_heads", "compute_dtype", "q_tile"))
def causal_attn(x, w_attn, b_attn, w_proj, b_proj, *, n_heads,
                compute_dtype=jnp.bfloat16, q_tile=None):
    """x: (B,T,C); w_attn: (C,3C); b_attn: (3C,); w_proj: (C,C); b_proj: (C,)."""
    B, T, C = x.shape
    H = n_heads
    Dh = C // H
    scale = Dh ** -0.5
    out_dtype = x.dtype
    approx_recip = bool(jnp.finfo(compute_dtype).bits <= 16)

    # MXU operands in compute_dtype (bf16 by default); biases stay f32 (added
    # onto the f32 accumulator inside the kernels).
    xc = x.astype(compute_dtype)
    wa = w_attn.astype(compute_dtype)
    wp = w_proj.astype(compute_dtype)
    ba = b_attn.reshape(1, 3 * C).astype(jnp.float32)
    bp = b_proj.reshape(1, C).astype(jnp.float32)

    # --- Kernel A: QKV projection, batch folded into rows (lane-dense slab) ---
    R = B * T
    Rt = _pick_tile(R, (256, 128, 64, 32, 16, 8))
    x2d = xc.reshape(R, C)
    k2d, q2d, v2d = pl.pallas_call(
        functools.partial(_qkv_proj_kernel, n_embd=C, scale=scale),
        out_shape=tuple(jax.ShapeDtypeStruct((R, C), compute_dtype) for _ in range(3)),
        grid_spec=pltpu.PrefetchScalarGridSpec(
            num_scalar_prefetch=0,
            grid=(R // Rt,),
            in_specs=[
                pl.BlockSpec((Rt, C), lambda i: (i, 0)),           # x rows
                pl.BlockSpec((C, 3 * C), lambda i: (0, 0)),        # w_attn (resident)
                pl.BlockSpec((1, 3 * C), lambda i: (0, 0)),        # b_attn
            ],
            out_specs=(
                pl.BlockSpec((Rt, C), lambda i: (i, 0)),           # k
                pl.BlockSpec((Rt, C), lambda i: (i, 0)),           # q (pre-scaled)
                pl.BlockSpec((Rt, C), lambda i: (i, 0)),           # v
            ),
        ),
        compiler_params=pltpu.CompilerParams(dimension_semantics=("parallel",)),
    )(x2d, wa, ba)
    k3 = k2d.reshape(B, T, C)
    q3 = q2d.reshape(B, T, C)
    v3 = v2d.reshape(B, T, C)

    # --- Kernel B: flash attention + output projection ---
    Tt = q_tile if q_tile is not None else _pick_tile(T, (256, 128))
    nT = T // Tt
    kernel = functools.partial(
        _flash_attn_proj_kernel, n_heads=H, q_tile=Tt,
        compute_dtype=compute_dtype, approx_recip=approx_recip)
    return pl.pallas_call(
        kernel,
        out_shape=jax.ShapeDtypeStruct((B, T, C), out_dtype),
        grid_spec=pltpu.PrefetchScalarGridSpec(
            num_scalar_prefetch=0,
            grid=(B, nT, nT),                                      # (batch, q tile, kv tile)
            in_specs=[
                pl.BlockSpec((1, Tt, C), lambda b, i, j: (b, i, 0)),                  # q
                # clamp kv index for skipped (above-diagonal) tiles -> no wasted DMA
                pl.BlockSpec((1, Tt, C), lambda b, i, j: (b, jnp.minimum(j, i), 0)),  # k
                pl.BlockSpec((1, Tt, C), lambda b, i, j: (b, jnp.minimum(j, i), 0)),  # v
                pl.BlockSpec((C, C), lambda b, i, j: (0, 0)),                         # w_proj
                pl.BlockSpec((1, C), lambda b, i, j: (0, 0)),                         # b_proj
            ],
            out_specs=pl.BlockSpec((1, Tt, C), lambda b, i, j: (b, i, 0)),
            scratch_shapes=[
                pltpu.VMEM((H, Tt, 1), jnp.float32),    # m: running row max
                pltpu.VMEM((H, Tt, 1), jnp.float32),    # l: running softmax denom
                pltpu.VMEM((H, Tt, Dh), jnp.float32),   # acc: unnormalized output
            ],
        ),
        compiler_params=pltpu.CompilerParams(
            dimension_semantics=("parallel", "parallel", "arbitrary"),
            vmem_limit_bytes=48 * 1024 * 1024,          # explicit budget (fits v7x 64 MiB)
        ),
    )(q3, k3, v3, wp, bp)


def causal_attn_ref(x, w_attn, b_attn, w_proj, b_proj, *, n_heads):
    """Pure-JAX reference mirroring the PyTorch forward exactly (f32, highest prec)."""
    B, T, C = x.shape
    H = n_heads
    Dh = C // H
    qkv = jnp.einsum("btc,cd->btd", x, w_attn, precision="highest") + b_attn
    k, q, v = qkv[..., :C], qkv[..., C:2 * C], qkv[..., 2 * C:]
    k = k.reshape(B, T, H, Dh).transpose(0, 2, 1, 3)
    q = q.reshape(B, T, H, Dh).transpose(0, 2, 1, 3)
    v = v.reshape(B, T, H, Dh).transpose(0, 2, 1, 3)
    wei = jnp.einsum("bhtd,bhsd->bhts", q, k, precision="highest") * (Dh ** -0.5)
    tril = jnp.tril(jnp.ones((T, T), dtype=bool))
    wei = jnp.where(tril[None, None], wei, -jnp.inf)
    wei = jax.nn.softmax(wei, axis=-1)
    out = jnp.einsum("bhts,bhsd->bhtd", wei, v, precision="highest")
    out = out.transpose(0, 2, 1, 3).reshape(B, T, C)
    return jnp.einsum("btc,cd->btd", out, w_proj, precision="highest") + b_proj


if __name__ == "__main__":
    # Small config: n_embd=32, n_heads=4 (head_sz=8), blk_sz=T=8, B=2, dropout=0
    B, T, C = 2, 8, 32
    n_heads = 4

    key = jax.random.PRNGKey(0)
    kx, kw1, kb1, kw2, kb2 = jax.random.split(key, 5)

    x = jax.random.normal(kx, (B, T, C), dtype=jnp.float32)

    # nn.Linear-style deterministic init (uniform in +/- 1/sqrt(fan_in)).
    bound = 1.0 / (C ** 0.5)
    w_attn = jax.random.uniform(kw1, (C, 3 * C), jnp.float32, -bound, bound)
    b_attn = jax.random.uniform(kb1, (3 * C,), jnp.float32, -bound, bound)
    w_proj = jax.random.uniform(kw2, (C, C), jnp.float32, -bound, bound)
    b_proj = jax.random.uniform(kb2, (C,), jnp.float32, -bound, bound)

    y_ref = causal_attn_ref(x, w_attn, b_attn, w_proj, b_proj, n_heads=n_heads)

    # Exact-precision path (f32 MXU operands) -- tight structural check.
    y32 = causal_attn(x, w_attn, b_attn, w_proj, b_proj, n_heads=n_heads,
                      compute_dtype=jnp.float32)
    y32 = jax.block_until_ready(y32)
    assert y32.shape == (B, T, C)
    assert jnp.allclose(y32, y_ref, atol=1e-3, rtol=1e-3), "f32 mismatch vs reference"

    # Production path: bf16 MXU operands, f32 accumulation / softmax.
    ybf = causal_attn(x, w_attn, b_attn, w_proj, b_proj, n_heads=n_heads,
                      compute_dtype=jnp.bfloat16)
    ybf = jax.block_until_ready(ybf)
    assert ybf.shape == (B, T, C)
    assert jnp.allclose(ybf.astype(jnp.float32), y_ref, atol=5e-2, rtol=5e-2), \
        "bf16 mismatch vs reference"

    print("KERNEL_OK")
</pallas_src>

<mosaic_0001>
module attributes {stable_mosaic.version = 11 : i64} {
  func.func @_flash_attn_proj_kernel(%arg0: i32, %arg1: i32, %arg2: i32, %arg3: memref<1x8x32xf32, #tpu.memory_space<vmem>>, %arg4: memref<1x8x32xf32, #tpu.memory_space<vmem>>, %arg5: memref<1x8x32xf32, #tpu.memory_space<vmem>>, %arg6: memref<32x32xf32, #tpu.memory_space<vmem>>, %arg7: memref<1x32xf32, #tpu.memory_space<vmem>>, %arg8: memref<1x8x32xf32, #tpu.memory_space<vmem>>, %arg9: memref<4x8x1xf32, #tpu.memory_space<vmem>>, %arg10: memref<4x8x1xf32, #tpu.memory_space<vmem>>, %arg11: memref<4x8x8xf32, #tpu.memory_space<vmem>>) attributes {dimension_semantics = [#tpu.dimension_semantics<parallel>, #tpu.dimension_semantics<parallel>, #tpu.dimension_semantics<arbitrary>], iteration_bounds = array<i64: 2, 1, 1>, scalar_prefetch = 0 : i64, scratch_operands = 3 : i64, tpu.core_type = #tpu.core_type<tc>, window_params = [{transform_indices = @transform_0, window_bounds = array<i64: 1, 8, 32>}, {transform_indices = @transform_1, window_bounds = array<i64: 1, 8, 32>}, {transform_indices = @transform_2, window_bounds = array<i64: 1, 8, 32>}, {pipeline_mode = #tpu.pipeline_mode<synchronous>, transform_indices = @transform_3, window_bounds = array<i64: 32, 32>}, {pipeline_mode = #tpu.pipeline_mode<synchronous>, transform_indices = @transform_4, window_bounds = array<i64: 1, 32>}, {transform_indices = @transform_5, window_bounds = array<i64: 1, 8, 32>}]} {
    %c0_i32 = arith.constant 0 : i32
    %0 = arith.cmpi eq, %arg2, %c0_i32 : i32
    %1 = arith.extui %0 : i1 to i32
    %c0_i32_0 = arith.constant 0 : i32
    %2 = arith.cmpi ne, %1, %c0_i32_0 : i32
    scf.if %2 {
      %cst = arith.constant -1.000000e+30 : f32
      %9 = vector.broadcast %cst : f32 to vector<4x8x1xf32>
      %c0 = arith.constant 0 : index
      %c0_3 = arith.constant 0 : index
      %c0_4 = arith.constant 0 : index
      %10 = vector.load %arg9[%c0, %c0_3, %c0_4] : memref<4x8x1xf32, #tpu.memory_space<vmem>>, vector<4x8x1xf32>
      tpu.vector_store %arg9[%c0, %c0_3, %c0_4], %9 {strides = array<i32>} : memref<4x8x1xf32, #tpu.memory_space<vmem>>, vector<4x8x1xf32>,
      %cst_5 = arith.constant 0.000000e+00 : f32
      %11 = vector.broadcast %cst_5 : f32 to vector<4x8x1xf32>
      %c0_6 = arith.constant 0 : index
      %c0_7 = arith.constant 0 : index
      %c0_8 = arith.constant 0 : index
      %12 = vector.load %arg10[%c0_6, %c0_7, %c0_8] : memref<4x8x1xf32, #tpu.memory_space<vmem>>, vector<4x8x1xf32>
      tpu.vector_store %arg10[%c0_6, %c0_7, %c0_8], %11 {strides = array<i32>} : memref<4x8x1xf32, #tpu.memory_space<vmem>>, vector<4x8x1xf32>,
      %cst_9 = arith.constant 0.000000e+00 : f32
      %13 = vector.broadcast %cst_9 : f32 to vector<4x8x8xf32>
      %c0_10 = arith.constant 0 : index
      %c0_11 = arith.constant 0 : index
      %c0_12 = arith.constant 0 : index
      %14 = vector.load %arg11[%c0_10, %c0_11, %c0_12] : memref<4x8x8xf32, #tpu.memory_space<vmem>>, vector<4x8x8xf32>
      tpu.vector_store %arg11[%c0_10, %c0_11, %c0_12], %13 {strides = array<i32>} : memref<4x8x8xf32, #tpu.memory_space<vmem>>, vector<4x8x8xf32>,
    } else {
    }
    %3 = arith.cmpi sle, %arg2, %arg1 : i32
    %4 = arith.extui %3 : i1 to i32
    %c0_i32_1 = arith.constant 0 : i32
    %5 = arith.cmpi ne, %4, %c0_i32_1 : i32
    scf.if %5 {
      %c0 = arith.constant 0 : index
      %c0_3 = arith.constant 0 : index
      %c0_4 = arith.constant 0 : index
      %9 = vector.load %arg3[%c0, %c0_3, %c0_4] : memref<1x8x32xf32, #tpu.memory_space<vmem>>, vector<1x8x32xf32>
      %10 = vector.shape_cast %9 : vector<1x8x32xf32> to vector<8x32xf32>
      %c0_5 = arith.constant 0 : index
      %c0_6 = arith.constant 0 : index
      %c0_7 = arith.constant 0 : index
      %11 = vector.load %arg4[%c0_5, %c0_6, %c0_7] : memref<1x8x32xf32, #tpu.memory_space<vmem>>, vector<1x8x32xf32>
      %12 = vector.shape_cast %11 : vector<1x8x32xf32> to vector<8x32xf32>
      %c0_8 = arith.constant 0 : index
      %c0_9 = arith.constant 0 : index
      %c0_10 = arith.constant 0 : index
      %13 = vector.load %arg5[%c0_8, %c0_9, %c0_10] : memref<1x8x32xf32, #tpu.memory_space<vmem>>, vector<1x8x32xf32>
      %14 = vector.shape_cast %13 : vector<1x8x32xf32> to vector<8x32xf32>
      %c8_i32 = arith.constant 8 : i32
      %15 = arith.muli %arg1, %c8_i32 : i32
      %16 = tpu.iota {dimensions = array<i32: 0>} : vector<8x8xi32>
      %17 = vector.broadcast %15 : i32 to vector<8x8xi32>
      %18 = arith.addi %17, %16 : vector<8x8xi32>
      %c8_i32_11 = arith.constant 8 : i32
      %19 = arith.muli %arg2, %c8_i32_11 : i32
      %20 = tpu.iota {dimensions = array<i32: 1>} : vector<8x8xi32>
      %21 = vector.broadcast %19 : i32 to vector<8x8xi32>
      %22 = arith.addi %21, %20 : vector<8x8xi32>
      %23 = arith.cmpi sge, %18, %22 : vector<8x8xi32>
      %24 = vector.extract_strided_slice %10 {offsets = [0, 0], sizes = [8, 8], strides = [1, 1]} : vector<8x32xf32> to vector<8x8xf32>
      %25 = vector.extract_strided_slice %12 {offsets = [0, 0], sizes = [8, 8], strides = [1, 1]} : vector<8x32xf32> to vector<8x8xf32>
      %26 = vector.extract_strided_slice %14 {offsets = [0, 0], sizes = [8, 8], strides = [1, 1]} : vector<8x32xf32> to vector<8x8xf32>
      %cst = arith.constant dense<0.000000e+00> : vector<8x8xf32>
      %27 = tpu.matmul %24, %25, %cst {dimension_numbers = #tpu.dot_dimension_numbers<[1], [1], [0], [0], [0, 0, 1, 0], [], []>} : vector<8x8xf32>, vector<8x8xf32>, vector<8x8xf32> -> vector<8x8xf32>
      %cst_12 = arith.constant -1.000000e+30 : f32
      %28 = vector.broadcast %cst_12 : f32 to vector<8x8xf32>
      %29 = arith.select %23, %27, %28 : vector<8x8xi1>, vector<8x8xf32>
      %c0_13 = arith.constant 0 : index
      %c0_14 = arith.constant 0 : index
      %c0_15 = arith.constant 0 : index
      %30 = vector.load %arg9[%c0_13, %c0_14, %c0_15] : memref<4x8x1xf32, #tpu.memory_space<vmem>>, vector<1x8x1xf32>
      %31 = vector.shape_cast %30 : vector<1x8x1xf32> to vector<8x1xf32>
      %cst_16 = arith.constant dense<0xFF800000> : vector<8xf32>
      %32 = vector.multi_reduction <maximumf>, %29, %cst_16 [1] : vector<8x8xf32> to vector<8xf32>
      %33 = vector.shape_cast %32 : vector<8xf32> to vector<8x1xf32>
      %34 = arith.maximumf %31, %33 : vector<8x1xf32>
      %35 = arith.subf %31, %34 : vector<8x1xf32>
      %36 = math.exp %35 : vector<8x1xf32>
      %37 = vector.broadcast %34 : vector<8x1xf32> to vector<8x8xf32>
      %38 = arith.subf %29, %37 : vector<8x8xf32>
      %39 = math.exp %38 : vector<8x8xf32>
      %c0_17 = arith.constant 0 : index
      %c0_18 = arith.constant 0 : index
      %c0_19 = arith.constant 0 : index
      %40 = vector.load %arg10[%c0_17, %c0_18, %c0_19] : memref<4x8x1xf32, #tpu.memory_space<vmem>>, vector<1x8x1xf32>
      %41 = vector.shape_cast %40 : vector<1x8x1xf32> to vector<8x1xf32>
      %42 = arith.mulf %36, %41 : vector<8x1xf32>
      %cst_20 = arith.constant dense<0.000000e+00> : vector<8xf32>
      %43 = vector.multi_reduction <add>, %39, %cst_20 [1] : vector<8x8xf32> to vector<8xf32>
      %44 = vector.shape_cast %43 : vector<8xf32> to vector<8x1xf32>
      %45 = arith.addf %42, %44 : vector<8x1xf32>
      %c0_21 = arith.constant 0 : index
      %c0_22 = arith.constant 0 : index
      %c0_23 = arith.constant 0 : index
      %46 = vector.load %arg10[%c0_21, %c0_22, %c0_23] : memref<4x8x1xf32, #tpu.memory_space<vmem>>, vector<1x8x1xf32>
      %47 = vector.shape_cast %46 : vector<1x8x1xf32> to vector<8x1xf32>
      %48 = vector.shape_cast %45 : vector<8x1xf32> to vector<1x8x1xf32>
      tpu.vector_store %arg10[%c0_21, %c0_22, %c0_23], %48 {strides = array<i32>} : memref<4x8x1xf32, #tpu.memory_space<vmem>>, vector<1x8x1xf32>,
      %cst_24 = arith.constant dense<0.000000e+00> : vector<8x8xf32>
      %49 = tpu.matmul %39, %26, %cst_24 {dimension_numbers = #tpu.dot_dimension_numbers<[1], [0], [0], [1], [0, 0, 1, 1], [], []>} : vector<8x8xf32>, vector<8x8xf32>, vector<8x8xf32> -> vector<8x8xf32>
      %c0_25 = arith.constant 0 : index
      %c0_26 = arith.constant 0 : index
      %c0_27 = arith.constant 0 : index
      %50 = vector.load %arg11[%c0_25, %c0_26, %c0_27] : memref<4x8x8xf32, #tpu.memory_space<vmem>>, vector<1x8x8xf32>
      %51 = vector.shape_cast %50 : vector<1x8x8xf32> to vector<8x8xf32>
      %52 = vector.broadcast %36 : vector<8x1xf32> to vector<8x8xf32>
      %53 = arith.mulf %52, %51 : vector<8x8xf32>
      %54 = arith.addf %53, %49 : vector<8x8xf32>
      %c0_28 = arith.constant 0 : index
      %c0_29 = arith.constant 0 : index
      %c0_30 = arith.constant 0 : index
      %55 = vector.load %arg11[%c0_28, %c0_29, %c0_30] : memref<4x8x8xf32, #tpu.memory_space<vmem>>, vector<1x8x8xf32>
      %56 = vector.shape_cast %55 : vector<1x8x8xf32> to vector<8x8xf32>
      %57 = vector.shape_cast %54 : vector<8x8xf32> to vector<1x8x8xf32>
      tpu.vector_store %arg11[%c0_28, %c0_29, %c0_30], %57 {strides = array<i32>} : memref<4x8x8xf32, #tpu.memory_space<vmem>>, vector<1x8x8xf32>,
      %c0_31 = arith.constant 0 : index
      %c0_32 = arith.constant 0 : index
      %c0_33 = arith.constant 0 : index
      %58 = vector.load %arg9[%c0_31, %c0_32, %c0_33] : memref<4x8x1xf32, #tpu.memory_space<vmem>>, vector<1x8x1xf32>
      %59 = vector.shape_cast %58 : vector<1x8x1xf32> to vector<8x1xf32>
      %60 = vector.shape_cast %34 : vector<8x1xf32> to vector<1x8x1xf32>
      tpu.vector_store %arg9[%c0_31, %c0_32, %c0_33], %60 {strides = array<i32>} : memref<4x8x1xf32, #tpu.memory_space<vmem>>, vector<1x8x1xf32>,
      %61 = vector.extract_strided_slice %10 {offsets = [0, 8], sizes = [8, 8], strides = [1, 1]} : vector<8x32xf32> to vector<8x8xf32>
      %62 = vector.extract_strided_slice %12 {offsets = [0, 8], sizes = [8, 8], strides = [1, 1]} : vector<8x32xf32> to vector<8x8xf32>
      %63 = vector.extract_strided_slice %14 {offsets = [0, 8], sizes = [8, 8], strides = [1, 1]} : vector<8x32xf32> to vector<8x8xf32>
      %cst_34 = arith.constant dense<0.000000e+00> : vector<8x8xf32>
      %64 = tpu.matmul %61, %62, %cst_34 {dimension_numbers = #tpu.dot_dimension_numbers<[1], [1], [0], [0], [0, 0, 1, 0], [], []>} : vector<8x8xf32>, vector<8x8xf32>, vector<8x8xf32> -> vector<8x8xf32>
      %cst_35 = arith.constant -1.000000e+30 : f32
      %65 = vector.broadcast %cst_35 : f32 to vector<8x8xf32>
      %66 = arith.select %23, %64, %65 : vector<8x8xi1>, vector<8x8xf32>
      %c1 = arith.constant 1 : index
      %c0_36 = arith.constant 0 : index
      %c0_37 = arith.constant 0 : index
      %67 = vector.load %arg9[%c1, %c0_36, %c0_37] : memref<4x8x1xf32, #tpu.memory_space<vmem>>, vector<1x8x1xf32>
      %68 = vector.shape_cast %67 : vector<1x8x1xf32> to vector<8x1xf32>
      %cst_38 = arith.constant dense<0xFF800000> : vector<8xf32>
      %69 = vector.multi_reduction <maximumf>, %66, %cst_38 [1] : vector<8x8xf32> to vector<8xf32>
      %70 = vector.shape_cast %69 : vector<8xf32> to vector<8x1xf32>
      %71 = arith.maximumf %68, %70 : vector<8x1xf32>
      %72 = arith.subf %68, %71 : vector<8x1xf32>
      %73 = math.exp %72 : vector<8x1xf32>
      %74 = vector.broadcast %71 : vector<8x1xf32> to vector<8x8xf32>
      %75 = arith.subf %66, %74 : vector<8x8xf32>
      %76 = math.exp %75 : vector<8x8xf32>
      %c1_39 = arith.constant 1 : index
      %c0_40 = arith.constant 0 : index
      %c0_41 = arith.constant 0 : index
      %77 = vector.load %arg10[%c1_39, %c0_40, %c0_41] : memref<4x8x1xf32, #tpu.memory_space<vmem>>, vector<1x8x1xf32>
      %78 = vector.shape_cast %77 : vector<1x8x1xf32> to vector<8x1xf32>
      %79 = arith.mulf %73, %78 : vector<8x1xf32>
      %cst_42 = arith.constant dense<0.000000e+00> : vector<8xf32>
      %80 = vector.multi_reduction <add>, %76, %cst_42 [1] : vector<8x8xf32> to vector<8xf32>
      %81 = vector.shape_cast %80 : vector<8xf32> to vector<8x1xf32>
      %82 = arith.addf %79, %81 : vector<8x1xf32>
      %c1_43 = arith.constant 1 : index
      %c0_44 = arith.constant 0 : index
      %c0_45 = arith.constant 0 : index
      %83 = vector.load %arg10[%c1_43, %c0_44, %c0_45] : memref<4x8x1xf32, #tpu.memory_space<vmem>>, vector<1x8x1xf32>
      %84 = vector.shape_cast %83 : vector<1x8x1xf32> to vector<8x1xf32>
      %85 = vector.shape_cast %82 : vector<8x1xf32> to vector<1x8x1xf32>
      tpu.vector_store %arg10[%c1_43, %c0_44, %c0_45], %85 {strides = array<i32>} : memref<4x8x1xf32, #tpu.memory_space<vmem>>, vector<1x8x1xf32>,
      %cst_46 = arith.constant dense<0.000000e+00> : vector<8x8xf32>
      %86 = tpu.matmul %76, %63, %cst_46 {dimension_numbers = #tpu.dot_dimension_numbers<[1], [0], [0], [1], [0, 0, 1, 1], [], []>} : vector<8x8xf32>, vector<8x8xf32>, vector<8x8xf32> -> vector<8x8xf32>
      %c1_47 = arith.constant 1 : index
      %c0_48 = arith.constant 0 : index
      %c0_49 = arith.constant 0 : index
      %87 = vector.load %arg11[%c1_47, %c0_48, %c0_49] : memref<4x8x8xf32, #tpu.memory_space<vmem>>, vector<1x8x8xf32>
      %88 = vector.shape_cast %87 : vector<1x8x8xf32> to vector<8x8xf32>
      %89 = vector.broadcast %73 : vector<8x1xf32> to vector<8x8xf32>
      %90 = arith.mulf %89, %88 : vector<8x8xf32>
      %91 = arith.addf %90, %86 : vector<8x8xf32>
      %c1_50 = arith.constant 1 : index
      %c0_51 = arith.constant 0 : index
      %c0_52 = arith.constant 0 : index
      %92 = vector.load %arg11[%c1_50, %c0_51, %c0_52] : memref<4x8x8xf32, #tpu.memory_space<vmem>>, vector<1x8x8xf32>
      %93 = vector.shape_cast %92 : vector<1x8x8xf32> to vector<8x8xf32>
      %94 = vector.shape_cast %91 : vector<8x8xf32> to vector<1x8x8xf32>
      tpu.vector_store %arg11[%c1_50, %c0_51, %c0_52], %94 {strides = array<i32>} : memref<4x8x8xf32, #tpu.memory_space<vmem>>, vector<1x8x8xf32>,
      %c1_53 = arith.constant 1 : index
      %c0_54 = arith.constant 0 : index
      %c0_55 = arith.constant 0 : index
      %95 = vector.load %arg9[%c1_53, %c0_54, %c0_55] : memref<4x8x1xf32, #tpu.memory_space<vmem>>, vector<1x8x1xf32>
      %96 = vector.shape_cast %95 : vector<1x8x1xf32> to vector<8x1xf32>
      %97 = vector.shape_cast %71 : vector<8x1xf32> to vector<1x8x1xf32>
      tpu.vector_store %arg9[%c1_53, %c0_54, %c0_55], %97 {strides = array<i32>} : memref<4x8x1xf32, #tpu.memory_space<vmem>>, vector<1x8x1xf32>,
      %98 = vector.extract_strided_slice %10 {offsets = [0, 16], sizes = [8, 8], strides = [1, 1]} : vector<8x32xf32> to vector<8x8xf32>
      %99 = vector.extract_strided_slice %12 {offsets = [0, 16], sizes = [8, 8], strides = [1, 1]} : vector<8x32xf32> to vector<8x8xf32>
      %100 = vector.extract_strided_slice %14 {offsets = [0, 16], sizes = [8, 8], strides = [1, 1]} : vector<8x32xf32> to vector<8x8xf32>
      %cst_56 = arith.constant dense<0.000000e+00> : vector<8x8xf32>
      %101 = tpu.matmul %98, %99, %cst_56 {dimension_numbers = #tpu.dot_dimension_numbers<[1], [1], [0], [0], [0, 0, 1, 0], [], []>} : vector<8x8xf32>, vector<8x8xf32>, vector<8x8xf32> -> vector<8x8xf32>
      %cst_57 = arith.constant -1.000000e+30 : f32
      %102 = vector.broadcast %cst_57 : f32 to vector<8x8xf32>
      %103 = arith.select %23, %101, %102 : vector<8x8xi1>, vector<8x8xf32>
      %c2 = arith.constant 2 : index
      %c0_58 = arith.constant 0 : index
      %c0_59 = arith.constant 0 : index
      %104 = vector.load %arg9[%c2, %c0_58, %c0_59] : memref<4x8x1xf32, #tpu.memory_space<vmem>>, vector<1x8x1xf32>
      %105 = vector.shape_cast %104 : vector<1x8x1xf32> to vector<8x1xf32>
      %cst_60 = arith.constant dense<0xFF800000> : vector<8xf32>
      %106 = vector.multi_reduction <maximumf>, %103, %cst_60 [1] : vector<8x8xf32> to vector<8xf32>
      %107 = vector.shape_cast %106 : vector<8xf32> to vector<8x1xf32>
      %108 = arith.maximumf %105, %107 : vector<8x1xf32>
      %109 = arith.subf %105, %108 : vector<8x1xf32>
      %110 = math.exp %109 : vector<8x1xf32>
      %111 = vector.broadcast %108 : vector<8x1xf32> to vector<8x8xf32>
      %112 = arith.subf %103, %111 : vector<8x8xf32>
      %113 = math.exp %112 : vector<8x8xf32>
      %c2_61 = arith.constant 2 : index
      %c0_62 = arith.constant 0 : index
      %c0_63 = arith.constant 0 : index
      %114 = vector.load %arg10[%c2_61, %c0_62, %c0_63] : memref<4x8x1xf32, #tpu.memory_space<vmem>>, vector<1x8x1xf32>
      %115 = vector.shape_cast %114 : vector<1x8x1xf32> to vector<8x1xf32>
      %116 = arith.mulf %110, %115 : vector<8x1xf32>
      %cst_64 = arith.constant dense<0.000000e+00> : vector<8xf32>
      %117 = vector.multi_reduction <add>, %113, %cst_64 [1] : vector<8x8xf32> to vector<8xf32>
      %118 = vector.shape_cast %117 : vector<8xf32> to vector<8x1xf32>
      %119 = arith.addf %116, %118 : vector<8x1xf32>
      %c2_65 = arith.constant 2 : index
      %c0_66 = arith.constant 0 : index
      %c0_67 = arith.constant 0 : index
      %120 = vector.load %arg10[%c2_65, %c0_66, %c0_67] : memref<4x8x1xf32, #tpu.memory_space<vmem>>, vector<1x8x1xf32>
      %121 = vector.shape_cast %120 : vector<1x8x1xf32> to vector<8x1xf32>
      %122 = vector.shape_cast %119 : vector<8x1xf32> to vector<1x8x1xf32>
      tpu.vector_store %arg10[%c2_65, %c0_66, %c0_67], %122 {strides = array<i32>} : memref<4x8x1xf32, #tpu.memory_space<vmem>>, vector<1x8x1xf32>,
      %cst_68 = arith.constant dense<0.000000e+00> : vector<8x8xf32>
      %123 = tpu.matmul %113, %100, %cst_68 {dimension_numbers = #tpu.dot_dimension_numbers<[1], [0], [0], [1], [0, 0, 1, 1], [], []>} : vector<8x8xf32>, vector<8x8xf32>, vector<8x8xf32> -> vector<8x8xf32>
      %c2_69 = arith.constant 2 : index
      %c0_70 = arith.constant 0 : index
      %c0_71 = arith.constant 0 : index
      %124 = vector.load %arg11[%c2_69, %c0_70, %c0_71] : memref<4x8x8xf32, #tpu.memory_space<vmem>>, vector<1x8x8xf32>
      %125 = vector.shape_cast %124 : vector<1x8x8xf32> to vector<8x8xf32>
      %126 = vector.broadcast %110 : vector<8x1xf32> to vector<8x8xf32>
      %127 = arith.mulf %126, %125 : vector<8x8xf32>
      %128 = arith.addf %127, %123 : vector<8x8xf32>
      %c2_72 = arith.constant 2 : index
      %c0_73 = arith.constant 0 : index
      %c0_74 = arith.constant 0 : index
      %129 = vector.load %arg11[%c2_72, %c0_73, %c0_74] : memref<4x8x8xf32, #tpu.memory_space<vmem>>, vector<1x8x8xf32>
      %130 = vector.shape_cast %129 : vector<1x8x8xf32> to vector<8x8xf32>
      %131 = vector.shape_cast %128 : vector<8x8xf32> to vector<1x8x8xf32>
      tpu.vector_store %arg11[%c2_72, %c0_73, %c0_74], %131 {strides = array<i32>} : memref<4x8x8xf32, #tpu.memory_space<vmem>>, vector<1x8x8xf32>,
      %c2_75 = arith.constant 2 : index
      %c0_76 = arith.constant 0 : index
      %c0_77 = arith.constant 0 : index
      %132 = vector.load %arg9[%c2_75, %c0_76, %c0_77] : memref<4x8x1xf32, #tpu.memory_space<vmem>>, vector<1x8x1xf32>
      %133 = vector.shape_cast %132 : vector<1x8x1xf32> to vector<8x1xf32>
      %134 = vector.shape_cast %108 : vector<8x1xf32> to vector<1x8x1xf32>
      tpu.vector_store %arg9[%c2_75, %c0_76, %c0_77], %134 {strides = array<i32>} : memref<4x8x1xf32, #tpu.memory_space<vmem>>, vector<1x8x1xf32>,
      %135 = vector.extract_strided_slice %10 {offsets = [0, 24], sizes = [8, 8], strides = [1, 1]} : vector<8x32xf32> to vector<8x8xf32>
      %136 = vector.extract_strided_slice %12 {offsets = [0, 24], sizes = [8, 8], strides = [1, 1]} : vector<8x32xf32> to vector<8x8xf32>
      %137 = vector.extract_strided_slice %14 {offsets = [0, 24], sizes = [8, 8], strides = [1, 1]} : vector<8x32xf32> to vector<8x8xf32>
      %cst_78 = arith.constant dense<0.000000e+00> : vector<8x8xf32>
      %138 = tpu.matmul %135, %136, %cst_78 {dimension_numbers = #tpu.dot_dimension_numbers<[1], [1], [0], [0], [0, 0, 1, 0], [], []>} : vector<8x8xf32>, vector<8x8xf32>, vector<8x8xf32> -> vector<8x8xf32>
      %cst_79 = arith.constant -1.000000e+30 : f32
      %139 = vector.broadcast %cst_79 : f32 to vector<8x8xf32>
      %140 = arith.select %23, %138, %139 : vector<8x8xi1>, vector<8x8xf32>
      %c3 = arith.constant 3 : index
      %c0_80 = arith.constant 0 : index
      %c0_81 = arith.constant 0 : index
      %141 = vector.load %arg9[%c3, %c0_80, %c0_81] : memref<4x8x1xf32, #tpu.memory_space<vmem>>, vector<1x8x1xf32>
      %142 = vector.shape_cast %141 : vector<1x8x1xf32> to vector<8x1xf32>
      %cst_82 = arith.constant dense<0xFF800000> : vector<8xf32>
      %143 = vector.multi_reduction <maximumf>, %140, %cst_82 [1] : vector<8x8xf32> to vector<8xf32>
      %144 = vector.shape_cast %143 : vector<8xf32> to vector<8x1xf32>
      %145 = arith.maximumf %142, %144 : vector<8x1xf32>
      %146 = arith.subf %142, %145 : vector<8x1xf32>
      %147 = math.exp %146 : vector<8x1xf32>
      %148 = vector.broadcast %145 : vector<8x1xf32> to vector<8x8xf32>
      %149 = arith.subf %140, %148 : vector<8x8xf32>
      %150 = math.exp %149 : vector<8x8xf32>
      %c3_83 = arith.constant 3 : index
      %c0_84 = arith.constant 0 : index
      %c0_85 = arith.constant 0 : index
      %151 = vector.load %arg10[%c3_83, %c0_84, %c0_85] : memref<4x8x1xf32, #tpu.memory_space<vmem>>, vector<1x8x1xf32>
      %152 = vector.shape_cast %151 : vector<1x8x1xf32> to vector<8x1xf32>
      %153 = arith.mulf %147, %152 : vector<8x1xf32>
      %cst_86 = arith.constant dense<0.000000e+00> : vector<8xf32>
      %154 = vector.multi_reduction <add>, %150, %cst_86 [1] : vector<8x8xf32> to vector<8xf32>
      %155 = vector.shape_cast %154 : vector<8xf32> to vector<8x1xf32>
      %156 = arith.addf %153, %155 : vector<8x1xf32>
      %c3_87 = arith.constant 3 : index
      %c0_88 = arith.constant 0 : index
      %c0_89 = arith.constant 0 : index
      %157 = vector.load %arg10[%c3_87, %c0_88, %c0_89] : memref<4x8x1xf32, #tpu.memory_space<vmem>>, vector<1x8x1xf32>
      %158 = vector.shape_cast %157 : vector<1x8x1xf32> to vector<8x1xf32>
      %159 = vector.shape_cast %156 : vector<8x1xf32> to vector<1x8x1xf32>
      tpu.vector_store %arg10[%c3_87, %c0_88, %c0_89], %159 {strides = array<i32>} : memref<4x8x1xf32, #tpu.memory_space<vmem>>, vector<1x8x1xf32>,
      %cst_90 = arith.constant dense<0.000000e+00> : vector<8x8xf32>
      %160 = tpu.matmul %150, %137, %cst_90 {dimension_numbers = #tpu.dot_dimension_numbers<[1], [0], [0], [1], [0, 0, 1, 1], [], []>} : vector<8x8xf32>, vector<8x8xf32>, vector<8x8xf32> -> vector<8x8xf32>
      %c3_91 = arith.constant 3 : index
      %c0_92 = arith.constant 0 : index
      %c0_93 = arith.constant 0 : index
      %161 = vector.load %arg11[%c3_91, %c0_92, %c0_93] : memref<4x8x8xf32, #tpu.memory_space<vmem>>, vector<1x8x8xf32>
      %162 = vector.shape_cast %161 : vector<1x8x8xf32> to vector<8x8xf32>
      %163 = vector.broadcast %147 : vector<8x1xf32> to vector<8x8xf32>
      %164 = arith.mulf %163, %162 : vector<8x8xf32>
      %165 = arith.addf %164, %160 : vector<8x8xf32>
      %c3_94 = arith.constant 3 : index
      %c0_95 = arith.constant 0 : index
      %c0_96 = arith.constant 0 : index
      %166 = vector.load %arg11[%c3_94, %c0_95, %c0_96] : memref<4x8x8xf32, #tpu.memory_space<vmem>>, vector<1x8x8xf32>
      %167 = vector.shape_cast %166 : vector<1x8x8xf32> to vector<8x8xf32>
      %168 = vector.shape_cast %165 : vector<8x8xf32> to vector<1x8x8xf32>
      tpu.vector_store %arg11[%c3_94, %c0_95, %c0_96], %168 {strides = array<i32>} : memref<4x8x8xf32, #tpu.memory_space<vmem>>, vector<1x8x8xf32>,
      %c3_97 = arith.constant 3 : index
      %c0_98 = arith.constant 0 : index
      %c0_99 = arith.constant 0 : index
      %169 = vector.load %arg9[%c3_97, %c0_98, %c0_99] : memref<4x8x1xf32, #tpu.memory_space<vmem>>, vector<1x8x1xf32>
      %170 = vector.shape_cast %169 : vector<1x8x1xf32> to vector<8x1xf32>
      %171 = vector.shape_cast %145 : vector<8x1xf32> to vector<1x8x1xf32>
      tpu.vector_store %arg9[%c3_97, %c0_98, %c0_99], %171 {strides = array<i32>} : memref<4x8x1xf32, #tpu.memory_space<vmem>>, vector<1x8x1xf32>,
    } else {
    }
    %6 = arith.cmpi eq, %arg2, %arg1 : i32
    %7 = arith.extui %6 : i1 to i32
    %c0_i32_2 = arith.constant 0 : i32
    %8 = arith.cmpi ne, %7, %c0_i32_2 : i32
    scf.if %8 {
      %c0 = arith.constant 0 : index
      %c0_3 = arith.constant 0 : index
      %c0_4 = arith.constant 0 : index
      %9 = vector.load %arg10[%c0, %c0_3, %c0_4] : memref<4x8x1xf32, #tpu.memory_space<vmem>>, vector<1x8x1xf32>
      %10 = vector.shape_cast %9 : vector<1x8x1xf32> to vector<8x1xf32>
      %11 = tpu.reciprocal %10 : vector<8x1xf32> -> vector<8x1xf32>
      %c0_5 = arith.constant 0 : index
      %c0_6 = arith.constant 0 : index
      %c0_7 = arith.constant 0 : index
      %12 = vector.load %arg11[%c0_5, %c0_6, %c0_7] : memref<4x8x8xf32, #tpu.memory_space<vmem>>, vector<1x8x8xf32>
      %13 = vector.shape_cast %12 : vector<1x8x8xf32> to vector<8x8xf32>
      %14 = vector.broadcast %11 : vector<8x1xf32> to vector<8x8xf32>
      %15 = arith.mulf %13, %14 : vector<8x8xf32>
      %c1 = arith.constant 1 : index
      %c0_8 = arith.constant 0 : index
      %c0_9 = arith.constant 0 : index
      %16 = vector.load %arg10[%c1, %c0_8, %c0_9] : memref<4x8x1xf32, #tpu.memory_space<vmem>>, vector<1x8x1xf32>
      %17 = vector.shape_cast %16 : vector<1x8x1xf32> to vector<8x1xf32>
      %18 = tpu.reciprocal %17 : vector<8x1xf32> -> vector<8x1xf32>
      %c1_10 = arith.constant 1 : index
      %c0_11 = arith.constant 0 : index
      %c0_12 = arith.constant 0 : index
      %19 = vector.load %arg11[%c1_10, %c0_11, %c0_12] : memref<4x8x8xf32, #tpu.memory_space<vmem>>, vector<1x8x8xf32>
      %20 = vector.shape_cast %19 : vector<1x8x8xf32> to vector<8x8xf32>
      %21 = vector.broadcast %18 : vector<8x1xf32> to vector<8x8xf32>
      %22 = arith.mulf %20, %21 : vector<8x8xf32>
      %c2 = arith.constant 2 : index
      %c0_13 = arith.constant 0 : index
      %c0_14 = arith.constant 0 : index
      %23 = vector.load %arg10[%c2, %c0_13, %c0_14] : memref<4x8x1xf32, #tpu.memory_space<vmem>>, vector<1x8x1xf32>
      %24 = vector.shape_cast %23 : vector<1x8x1xf32> to vector<8x1xf32>
      %25 = tpu.reciprocal %24 : vector<8x1xf32> -> vector<8x1xf32>
      %c2_15 = arith.constant 2 : index
      %c0_16 = arith.constant 0 : index
      %c0_17 = arith.constant 0 : index
      %26 = vector.load %arg11[%c2_15, %c0_16, %c0_17] : memref<4x8x8xf32, #tpu.memory_space<vmem>>, vector<1x8x8xf32>
      %27 = vector.shape_cast %26 : vector<1x8x8xf32> to vector<8x8xf32>
      %28 = vector.broadcast %25 : vector<8x1xf32> to vector<8x8xf32>
      %29 = arith.mulf %27, %28 : vector<8x8xf32>
      %c3 = arith.constant 3 : index
      %c0_18 = arith.constant 0 : index
      %c0_19 = arith.constant 0 : index
      %30 = vector.load %arg10[%c3, %c0_18, %c0_19] : memref<4x8x1xf32, #tpu.memory_space<vmem>>, vector<1x8x1xf32>
      %31 = vector.shape_cast %30 : vector<1x8x1xf32> to vector<8x1xf32>
      %32 = tpu.reciprocal %31 : vector<8x1xf32> -> vector<8x1xf32>
      %c3_20 = arith.constant 3 : index
      %c0_21 = arith.constant 0 : index
      %c0_22 = arith.constant 0 : index
      %33 = vector.load %arg11[%c3_20, %c0_21, %c0_22] : memref<4x8x8xf32, #tpu.memory_space<vmem>>, vector<1x8x8xf32>
      %34 = vector.shape_cast %33 : vector<1x8x8xf32> to vector<8x8xf32>
      %35 = vector.broadcast %32 : vector<8x1xf32> to vector<8x8xf32>
      %36 = arith.mulf %34, %35 : vector<8x8xf32>
      %37 = tpu.concatenate %15, %22, %29, %36 in 1 : vector<8x8xf32>, vector<8x8xf32>, vector<8x8xf32>, vector<8x8xf32> -> vector<8x32xf32>
      %c0_23 = arith.constant 0 : index
      %c0_24 = arith.constant 0 : index
      %38 = vector.load %arg6[%c0_23, %c0_24] : memref<32x32xf32, #tpu.memory_space<vmem>>, vector<32x32xf32>
      %cst = arith.constant dense<0.000000e+00> : vector<8x32xf32>
      %39 = tpu.matmul %37, %38, %cst {dimension_numbers = #tpu.dot_dimension_numbers<[1], [0], [0], [1], [0, 0, 1, 1], [], []>} : vector<8x32xf32>, vector<32x32xf32>, vector<8x32xf32> -> vector<8x32xf32>
      %c0_25 = arith.constant 0 : index
      %c0_26 = arith.constant 0 : index
      %40 = vector.load %arg7[%c0_25, %c0_26] : memref<1x32xf32, #tpu.memory_space<vmem>>, vector<1x32xf32>
      %41 = vector.broadcast %40 : vector<1x32xf32> to vector<8x32xf32>
      %42 = arith.addf %39, %41 : vector<8x32xf32>
      %c0_27 = arith.constant 0 : index
      %c0_28 = arith.constant 0 : index
      %c0_29 = arith.constant 0 : index
      %43 = vector.load %arg8[%c0_27, %c0_28, %c0_29] : memref<1x8x32xf32, #tpu.memory_space<vmem>>, vector<1x8x32xf32>
      %44 = vector.shape_cast %43 : vector<1x8x32xf32> to vector<8x32xf32>
      %45 = vector.shape_cast %42 : vector<8x32xf32> to vector<1x8x32xf32>
      tpu.vector_store %arg8[%c0_27, %c0_28, %c0_29], %45 {strides = array<i32>} : memref<1x8x32xf32, #tpu.memory_space<vmem>>, vector<1x8x32xf32>,
    } else {
    }
    return
  }
  func.func @transform_0(%arg0: i32, %arg1: i32, %arg2: i32) -> (i32, i32, i32) {
    %c0_i32 = arith.constant 0 : i32
    %c0_i32_0 = arith.constant 0 : i32
    return %arg0, %arg1, %c0_i32 : i32, i32, i32
  }
  func.func @transform_1(%arg0: i32, %arg1: i32, %arg2: i32) -> (i32, i32, i32) {
    %0 = arith.minsi %arg2, %arg1 : i32
    %c0_i32 = arith.constant 0 : i32
    %c0_i32_0 = arith.constant 0 : i32
    return %arg0, %0, %c0_i32 : i32, i32, i32
  }
  func.func @transform_2(%arg0: i32, %arg1: i32, %arg2: i32) -> (i32, i32, i32) {
    %0 = arith.minsi %arg2, %arg1 : i32
    %c0_i32 = arith.constant 0 : i32
    %c0_i32_0 = arith.constant 0 : i32
    return %arg0, %0, %c0_i32 : i32, i32, i32
  }
  func.func @transform_3(%arg0: i32, %arg1: i32, %arg2: i32) -> (i32, i32) {
    %c0_i32 = arith.constant 0 : i32
    %c0_i32_0 = arith.constant 0 : i32
    %c0_i32_1 = arith.constant 0 : i32
    return %c0_i32, %c0_i32_0 : i32, i32
  }
  func.func @transform_4(%arg0: i32, %arg1: i32, %arg2: i32) -> (i32, i32) {
    %c0_i32 = arith.constant 0 : i32
    %c0_i32_0 = arith.constant 0 : i32
    %c0_i32_1 = arith.constant 0 : i32
    return %c0_i32, %c0_i32_0 : i32, i32
  }
  func.func @transform_5(%arg0: i32, %arg1: i32, %arg2: i32) -> (i32, i32, i32) {
    %c0_i32 = arith.constant 0 : i32
    %c0_i32_0 = arith.constant 0 : i32
    return %arg0, %arg1, %c0_i32 : i32, i32, i32
  }
}

module attributes {stable_mosaic.version = 11 : i64} {
  func.func @_qkv_proj_kernel(%arg0: i32, %arg1: memref<16x32xf32, #tpu.memory_space<vmem>>, %arg2: memref<32x96xf32, #tpu.memory_space<vmem>>, %arg3: memref<1x96xf32, #tpu.memory_space<vmem>>, %arg4: memref<16x32xf32, #tpu.memory_space<vmem>>, %arg5: memref<16x32xf32, #tpu.memory_space<vmem>>, %arg6: memref<16x32xf32, #tpu.memory_space<vmem>>) attributes {dimension_semantics = [#tpu.dimension_semantics<parallel>], iteration_bounds = array<i64: 1>, scalar_prefetch = 0 : i64, scratch_operands = 0 : i64, tpu.core_type = #tpu.core_type<tc>, window_params = [{transform_indices = @transform_0, window_bounds = array<i64: 16, 32>}, {pipeline_mode = #tpu.pipeline_mode<synchronous>, transform_indices = @transform_1, window_bounds = array<i64: 32, 96>}, {pipeline_mode = #tpu.pipeline_mode<synchronous>, transform_indices = @transform_2, window_bounds = array<i64: 1, 96>}, {transform_indices = @transform_3, window_bounds = array<i64: 16, 32>}, {transform_indices = @transform_4, window_bounds = array<i64: 16, 32>}, {transform_indices = @transform_5, window_bounds = array<i64: 16, 32>}]} {
    %c0 = arith.constant 0 : index
    %c0_0 = arith.constant 0 : index
    %0 = vector.load %arg1[%c0, %c0_0] : memref<16x32xf32, #tpu.memory_space<vmem>>, vector<16x32xf32>
    %c0_1 = arith.constant 0 : index
    %c0_2 = arith.constant 0 : index
    %1 = vector.load %arg2[%c0_1, %c0_2] : memref<32x96xf32, #tpu.memory_space<vmem>>, vector<32x96xf32>
    %cst = arith.constant dense<0.000000e+00> : vector<16x96xf32>
    %2 = tpu.matmul %0, %1, %cst {dimension_numbers = #tpu.dot_dimension_numbers<[1], [0], [0], [1], [0, 0, 1, 1], [], []>} : vector<16x32xf32>, vector<32x96xf32>, vector<16x96xf32> -> vector<16x96xf32>
    %c0_3 = arith.constant 0 : index
    %c0_4 = arith.constant 0 : index
    %3 = vector.load %arg3[%c0_3, %c0_4] : memref<1x96xf32, #tpu.memory_space<vmem>>, vector<1x96xf32>
    %4 = vector.broadcast %3 : vector<1x96xf32> to vector<16x96xf32>
    %5 = arith.addf %2, %4 : vector<16x96xf32>
    %6 = vector.extract_strided_slice %5 {offsets = [0, 0], sizes = [16, 32], strides = [1, 1]} : vector<16x96xf32> to vector<16x32xf32>
    %c0_5 = arith.constant 0 : index
    %c0_6 = arith.constant 0 : index
    %7 = vector.load %arg4[%c0_5, %c0_6] : memref<16x32xf32, #tpu.memory_space<vmem>>, vector<16x32xf32>
    tpu.vector_store %arg4[%c0_5, %c0_6], %6 {strides = array<i32>} : memref<16x32xf32, #tpu.memory_space<vmem>>, vector<16x32xf32>,
    %8 = vector.extract_strided_slice %5 {offsets = [0, 32], sizes = [16, 32], strides = [1, 1]} : vector<16x96xf32> to vector<16x32xf32>
    %cst_7 = arith.constant 0.353553385 : f32
    %9 = vector.broadcast %cst_7 : f32 to vector<16x32xf32>
    %10 = arith.mulf %8, %9 : vector<16x32xf32>
    %c0_8 = arith.constant 0 : index
    %c0_9 = arith.constant 0 : index
    %11 = vector.load %arg5[%c0_8, %c0_9] : memref<16x32xf32, #tpu.memory_space<vmem>>, vector<16x32xf32>
    tpu.vector_store %arg5[%c0_8, %c0_9], %10 {strides = array<i32>} : memref<16x32xf32, #tpu.memory_space<vmem>>, vector<16x32xf32>,
    %12 = vector.extract_strided_slice %5 {offsets = [0, 64], sizes = [16, 32], strides = [1, 1]} : vector<16x96xf32> to vector<16x32xf32>
    %c0_10 = arith.constant 0 : index
    %c0_11 = arith.constant 0 : index
    %13 = vector.load %arg6[%c0_10, %c0_11] : memref<16x32xf32, #tpu.memory_space<vmem>>, vector<16x32xf32>
    tpu.vector_store %arg6[%c0_10, %c0_11], %12 {strides = array<i32>} : memref<16x32xf32, #tpu.memory_space<vmem>>, vector<16x32xf32>,
    return
  }
  func.func @transform_0(%arg0: i32) -> (i32, i32) {
    %c0_i32 = arith.constant 0 : i32
    %c0_i32_0 = arith.constant 0 : i32
    return %arg0, %c0_i32 : i32, i32
  }
  func.func @transform_1(%arg0: i32) -> (i32, i32) {
    %c0_i32 = arith.constant 0 : i32
    %c0_i32_0 = arith.constant 0 : i32
    %c0_i32_1 = arith.constant 0 : i32
    return %c0_i32, %c0_i32_0 : i32, i32
  }
  func.func @transform_2(%arg0: i32) -> (i32, i32) {
    %c0_i32 = arith.constant 0 : i32
    %c0_i32_0 = arith.constant 0 : i32
    %c0_i32_1 = arith.constant 0 : i32
    return %c0_i32, %c0_i32_0 : i32, i32
  }
  func.func @transform_3(%arg0: i32) -> (i32, i32) {
    %c0_i32 = arith.constant 0 : i32
    %c0_i32_0 = arith.constant 0 : i32
    return %arg0, %c0_i32 : i32, i32
  }
  func.func @transform_4(%arg0: i32) -> (i32, i32) {
    %c0_i32 = arith.constant 0 : i32
    %c0_i32_0 = arith.constant 0 : i32
    return %arg0, %c0_i32 : i32, i32
  }
  func.func @transform_5(%arg0: i32) -> (i32, i32) {
    %c0_i32 = arith.constant 0 : i32
    %c0_i32_0 = arith.constant 0 : i32
    return %arg0, %c0_i32 : i32, i32
  }
}

</mosaic_0001>

<bundles_post_ra>
// kernel: causal_attn.2
= control target key start
LH: loop header
LB: loop body
LE: loop exit
PB: predicated region body
PF: predicated region fallthrough
CT: control target
= control target key end

     0   :  { %11 = vsyncpa [#allocation3], 0  ;;  %s319_s0 = inlined_call_operand.hbm [shape: f32[16,32], index: 0, kind: input, shape index: {}]   ;;  %s320_s1 = inlined_call_operand.hbm [shape: f32[32,96], index: 1, kind: input, shape index: {}]   ;;  %s321_s2 = inlined_call_operand.vmem [shape: f32[1,96], index: 2, kind: input, shape index: {}]   ;;  %s322_s3 = inlined_call_operand.vmem [shape: f32[16,32], index: 3, kind: output, shape index: {0}]   ;;  %s323_s4 = inlined_call_operand.vmem [shape: f32[16,32], index: 4, kind: output, shape index: {1}]   ;;  %s324_s5 = inlined_call_operand.vmem [shape: f32[16,32], index: 5, kind: output, shape index: {2}]  }
   0x1   :  { %12 = vsyncpa [#allocation5], 0  ;;  %s248_s18 = smov [#allocation2]  }
   0x2   :  { %s18_s19 = sshll.u32 %s248_s18, 4  ;;  %s19_s19 = int_to_ptr.vmem [resolvable:$true] %s18_s19 }
   0x3   :  { %s212_s20 = scalar_lea.vmem %s19_s19, 256  ;;  %p217_p1 = scmp.lt.s32.totalorder %s19_s19, %s19_s19 }
   0x4   :  { %p213_p0 = scmp.ne.s32.totalorder %s19_s19, %s212_s20  ;;  %p218_p2 = scmp.lt.s32.totalorder %s212_s20, %s212_s20 }
   0x6   :  { %p219_p3 = por %p218_p2, %p217_p1 }
   0x8   :  { %p220_p4 = pnand %p219_p3, %p213_p0 }
   0xa   :  { %223 = shalt.err (!%p220_p4)
}
   0xb   :  { %s249_s21 = smov 128   ;;  %s250_s22 = smov 8  }
   0xc   :  { %24 = dma.hbm_to_vmem [thread:$0]  %s319_s0, 256, %s19_s19, [#allocation3], %s249_s21, %s249_s21, %s250_s22  }
   0xd   :  { %s251_s25 = smov [#allocation4]  }
   0xe   :  { %s30_s26 = sshll.u32 %s251_s25, 4  ;;  %s31_s26 = int_to_ptr.vmem [resolvable:$true] %s30_s26 }
   0xf   :  { %s232_s27 = scalar_lea.vmem %s31_s26, 512  ;;  %p237_p6 = scmp.lt.s32.totalorder %s31_s26, %s31_s26 }
  0x10   :  { %p233_p5 = scmp.ne.s32.totalorder %s31_s26, %s232_s27  ;;  %p238_p7 = scmp.lt.s32.totalorder %s232_s27, %s232_s27 }
  0x12   :  { %p239_p8 = por %p238_p7, %p237_p6 }
  0x14   :  { %p240_p9 = pnand %p239_p8, %p233_p5 }
  0x16   :  { %243 = shalt.err (!%p240_p9)
}
  0x17   :  { %36 = dma.hbm_to_vmem [thread:$0]  %s320_s1, 512, %s31_s26, [#allocation5], %s249_s21, %s249_s21, %s250_s22  }
  0x18   :  { %244 = dma.done.wait [#allocation3], 256  }
  0x19   :  { %245 = vsyncadd [#allocation3], 4294967040 }
  0x1a   :  { %246 = dma.done.wait [#allocation5], 512  }
  0x1b   :  { %247 = vsyncadd [#allocation5], 4294966784  ;;  %vm58_vm0 = vcmask 261120   ;;  %v50_v0 = vld [vmem:[#allocation4 + $0x18] sm:$0xff]  ;;  %v49_v1 = vld [vmem:[#allocation4 + $0x10] sm:$0xff]  ;;  %s252_s9 = smov 64  }
  0x1c   :  { %187 = vmatprep.subr.mxu0 %v50_v0  ;;  %v45_v2 = vld [vmem:[#allocation2] sm:$0xff]  ;;  %v48_v3 = vld [vmem:[#allocation4 + $0x8] sm:$0xff]  ;;  %v47_v4 = vld [vmem:[#allocation4] sm:$0xff]  ;;  %s253_s10 = smov 96  }
  0x1d   :  { %188 = vmatpush3.msra.mxu0 %v50_v0  ;;  %195 = vmatprep.mubr.msk.f32.mxu0 %vm58_vm0, %v45_v2  ;;  %v46_v5 = vld [vmem:[#allocation2 + $0x8] sm:$0xff]  ;;  %v178_v6 = vld [vmem:[%s321_s2] ss:$0 sm:$0xff] }
  0x1e   :  { %189 = vmatprep.subr.mxu0 %v49_v1 }
  0x1f   :  { %190 = vmatpush3.msra.mxu0 %v49_v1 }
  0x20   :  { %191 = vmatprep.subr.mxu0 %v48_v3 }
  0x21   :  { %192 = vmatpush3.msra.mxu0 %v48_v3 }
  0x22   :  { %193 = vmatprep.subr.mxu0 %v47_v4 }
  0x23   :  { %194 = vmatpush3.msra.mxu0 %v47_v4 }
  0x24   :  { %196 = vmatmul.mubr.msk.f32.vlgmr.msra.gmra.mxu0 %vm58_vm0, %v46_v5 }
  0xe4   :  { %v197_v7 = vpop.f32.mrf.mxu0 }
  0xe5   :  { %v137_v8 = vadd.f32 %v197_v7, %v178_v6 }
  0xe6   :  { %v131_v9 = vpop.f32.mrf.mxu0 }
  0xe7   :  { %141 = vst.msk [vmem:[%s322_s3 + $0x8] sm:$0xff] %vm58_vm0, %v137_v8  ;;  %v132_v10 = vadd.f32 %v178_v6, %v131_v9  ;;  %v143_v12 = vmul.f32 0.35355338, %v137_v8 }
  0xe9   :  { %140 = vst.msk [vmem:[%s322_s3] sm:$0xff] %vm58_vm0, %v132_v10  ;;  %156 = vrot.lane.b32.xlu1 %v132_v10, %s252_s9  ;;  %v142_v11 = vmul.f32 0.35355338, %v132_v10 }
  0xeb   :  { %146 = vrot.lane.b32.xlu0 %v142_v11, %s253_s10 }
  0xed   :  { %158 = vrot.lane.b32.xlu1 %v137_v8, %s252_s9 }
  0xef   :  { %148 = vrot.lane.b32.xlu0 %v143_v12, %s253_s10 }
 0x15b   :  { %v157_v13 = vpop.permute.xlu1 %156 }
 0x15c   :  { %162 = vst.msk [vmem:[%s324_s5] sm:$0xff] %vm58_vm0, %v157_v13 }
 0x15d   :  { %v147_v14 = vpop.permute.xlu0 %146 }
 0x15e   :  { %152 = vst.msk [vmem:[%s323_s4] sm:$0xff] %vm58_vm0, %v147_v14 }
 0x15f   :  { %v159_v15 = vpop.permute.xlu1 %158 }
 0x160   :  { %163 = vst.msk [vmem:[%s324_s5 + $0x8] sm:$0xff] %vm58_vm0, %v159_v15 }
 0x161   :  { %v149_v16 = vpop.permute.xlu0 %148 }
 0x162   :  { %153 = vst.msk [vmem:[%s323_s4 + $0x8] sm:$0xff] %vm58_vm0, %v149_v16 }
 0x163   :  { %176 = vsyncpa [#allocation3], 1 }
 0x164   :  { %177 = vsyncpa [#allocation5], 1 }

// kernel: causal_attn.3
= control target key start
LH: loop header
LB: loop body
LE: loop exit
PB: predicated region body
PF: predicated region fallthrough
CT: control target
= control target key end

     0   :  { %10 = vsyncpa [#allocation6], 0  ;;  %s1953_s0 = inlined_call_operand.vmem [shape: f32[2,8,32], index: 0, kind: input, shape index: {}]   ;;  %s1954_s1 = inlined_call_operand.vmem [shape: f32[2,8,32], index: 1, kind: input, shape index: {}]   ;;  %s1955_s2 = inlined_call_operand.vmem [shape: f32[2,8,32], index: 2, kind: input, shape index: {}]   ;;  %s1956_s3 = inlined_call_operand.vmem [shape: f32[32,32], index: 3, kind: input, shape index: {}]   ;;  %s1957_s4 = inlined_call_operand.vmem [shape: f32[1,32], index: 4, kind: input, shape index: {}]   ;;  %s1958_s5 = inlined_call_operand.hbm [shape: f32[2,8,32], index: 5, kind: output, shape index: {}]  }
   0x1   :  { %12 = vsyncpa [#allocation6 + $0x1], 0  ;;  %s1709_s18 = smov 0   ;;  %s1711_s19 = smov 0  }
   0x2   :  { %s1713_s20 = smov 0   ;;  %s1715_s21 = smov 0  }
   0x3   :  { %s1717_s22 = smov 0   ;;  %s1719_s23 = smov 0  }
   0x4 LB: > { %s1400_s24 = sadd.s32 4294967295, %s1666_s23   ;;  %s1401_s25 = sadd.s32 4294967294, %s1666_s23   ;;  %s1666_s23 = sphi %s1719_s23, %s18_s23   ;;  %s1662_s22 = sphi %s1717_s22, %s1965_s22   ;;  %s1658_s21 = sphi %s1715_s21, %s1964_s21   ;;  %s1654_s20 = sphi %s1713_s20, %s1963_s20   ;;  %s1650_s19 = sphi %s1711_s19, %s1962_s19   ;;  %s1646_s18 = sphi %s1709_s18, %s1961_s18  }
   0x5   : > { %s37_s26 = sadd.s32 1, %s1662_s22  ;;  %s180_s27 = sadd.s32 1, %s1654_s20 }
   0x6   : > { %p39_p0 = scmp.ge.s32.totalorder %s37_s26, 2  ;;  %p190_p1 = scmp.ne.s32.totalorder %s1654_s20, %s1650_s19 }
   0x7   : > { %p191_p2 = scmp.eq.s32.totalorder %s1400_s24, 1  ;;  %p196_p3 = scmp.ne.s32.totalorder %s1650_s19, %s1646_s18 }
   0x8   : > { %s1967_s26 = smov (%p39_p0, %s37_s26), 0  ;;  %p197_p5 = scmp.eq.s32.totalorder %s1401_s25, 1 }
   0x9   : > { %p1749_p4 = por %p191_p2, %p190_p1  ;;  %s175_s29 = ssub.s32 %s1662_s22, %s1967_s26 }
   0xa   : > { %p1404_p6 = scmp.ge.s32.totalorder %s1666_s23, 1  ;;  %p178_p7 = scmp.eq.s32.totalorder %s175_s29, 0 }
   0xb   : > { %p1756_p8 = por %p197_p5, %p196_p3  ;;  %p259_p9 = scmp.lt.s32.totalorder %s1666_s23, 3 }
   0xc   : > { %s1762_s6 = scalar_select %p178_p7, %s1654_s20, %s180_s27  }
   0xd   : > { %p260_p10 = pnand %p1404_p6, %p259_p9 }
   0xe   : > { %p307_p11 = scmp.lt.s32.totalorder (!%p260_p10), %s1658_s21, 1  ;;  %s1670_s15 = smov (!%p260_p10), 120  }
   0xf   : > { %263 = sbr.rel (%p260_p10) target bundleno = 1242 (0x4da), region = 40  ;;  %s1671_s16 = smov (!%p260_p10), 112  }
  0x10   : > { %s1672_s17 = smov (!%p260_p10), 104   ;;  %s1424_s29 = sshll.u32 (!%p260_p10), %s1658_s21, 7 }
  0x14   : > { %vm349_vm0 = vcmask 64512   ;;  %v1668_v0 = vmov 0.0   ;;  %vm1669_vm1 = vmmov 0   ;;  %s308_s7 = scalar_select %p307_p11, %s1658_s21, 1  ;;  %v362_v9 = vlaneseq }
  0x15   : > { %1448 = vmatprep.subr.mxu0 %v1668_v0  ;;  %350 = vst.msk [vmem:[#allocation4] sm:$0xff] %vm349_vm0, %v1668_v0  ;;  %351 = vst.msk [vmem:[#allocation4 + $0x8] sm:$0xff] %vm349_vm0, %v1668_v0  ;;  %1450 = vmatprep.mubr.msk.f32.mxu0 %vm1669_vm1, %v1668_v0  ;;  %vm340_vm3 = vcmask 7168   ;;  %v1673_v13 = vmov -1e+30   ;;  %v1674_v17 = vmov 0  }
  0x16   : > { %352 = vst.msk [vmem:[#allocation4 + $0x10] sm:$0xff] %vm349_vm0, %v1668_v0  ;;  %353 = vst.msk [vmem:[#allocation4 + $0x18] sm:$0xff] %vm349_vm0, %v1668_v0  ;;  %1458 = vmatprep.subr.mxu1 %v1668_v0  ;;  %1460 = vmatprep.mubr.msk.f32.mxu1 %vm1669_vm1, %v1668_v0  ;;  %s1780_s8 = sshll.u32 %s308_s7, 3  ;;  %v363_v10 = vshrl.u32 %v362_v9, 7  ;;  %v368_v11 = vand.u32 127, %v362_v9  ;;  %vm1191_vm4 = vcmask 130048  }
  0x17   : > { %s322_s11 = scalar_lea.vmem %s1954_s1, %s1780_s8  ;;  %s313_s14 = scalar_lea.vmem %s1953_s0, %s1780_s8  ;;  %341 = vst.msk [vmem:[#allocation2] sm:$0xff] %vm340_vm3, %v1673_v13  ;;  %342 = vst.msk [vmem:[#allocation2 + $0x8] sm:$0xff] %vm340_vm3, %v1673_v13  ;;  %1564 = vset.pattern.permute.xlu1 %v1674_v17  ;;  %1565 = vset.pattern.permute.xlu0 %v1674_v17  ;;  %vm1193_vm5 = vcmask 195584   ;;  %vm1206_vm6 = vcmask 261120  }
  0x18   : > { %v359_v1 = vld [vmem:[%s322_s11] sm:$0xff]  ;;  %vm371_vm2 = vcmp.ge.s32.totalorder %v363_v10, %v368_v11  ;;  %343 = vst.msk [vmem:[#allocation2 + $0x10] sm:$0xff] %vm340_vm3, %v1673_v13  ;;  %344 = vst.msk [vmem:[#allocation2 + $0x18] sm:$0xff] %vm340_vm3, %v1673_v13  ;;  %s333_s27 = scalar_lea.vmem %s1955_s2, %s1780_s8  ;;  %s1912_s11 = scalar_lea.hbm %s1958_s5, %s1424_s29 }
  0x19   : > { %559 = vrot.lane.b32.xlu0 %v359_v1, %s1670_s15  ;;  %1449 = vmatpush3.xpose.msk.msra.mxu0 %vm349_vm0, %v359_v1  ;;  %v358_v2 = vld [vmem:[%s313_s14] sm:$0xff]  ;;  %345 = vst.msk [vmem:[#allocation3] sm:$0xff] %vm340_vm3, %v1668_v0  ;;  %346 = vst.msk [vmem:[#allocation3 + $0x8] sm:$0xff] %vm340_vm3, %v1668_v0  ;;  %s1675_s14 = smov 8   ;;  %s1678_s21 = smov [#allocation5]  }
  0x1a   : > { %751 = vrot.lane.b32.xlu1 %v359_v1, %s1671_s16  ;;  %1453 = vmatprep.subr.mxu0 %v1668_v0  ;;  %347 = vst.msk [vmem:[#allocation3 + $0x10] sm:$0xff] %vm340_vm3, %v1668_v0  ;;  %348 = vst.msk [vmem:[#allocation3 + $0x18] sm:$0xff] %vm340_vm3, %v1668_v0  ;;  %v360_v34 = vld [vmem:[%s333_s27] sm:$0xff] }
  0x1c   : > { %1451 = vmatmul.mubr.msk.f32.vlgmr.msra.gmra.mxu0 %vm349_vm0, %v358_v2 }
  0x1d   : > { %557 = vrot.lane.b32.xlu0 %v358_v2, %s1670_s15  ;;  %1455 = vmatprep.mubr.msk.f32.mxu0 %vm1669_vm1, %v1668_v0 }
  0x1e   : > { %749 = vrot.lane.b32.xlu1 %v358_v2, %s1671_s16  ;;  %v1836_v30 = vld [vmem:[#allocation2] sm:$0xff]  ;;  %1454 = vmatpush3.msra.mxu0 %v360_v34  ;;  %v637_v35 = vld [vmem:[#allocation2 + $0x8] sm:$0xff] }
  0x1f   : > { %1463 = vmatprep.subr.mxu0 %v1668_v0  ;;  %v829_v38 = vld [vmem:[#allocation2 + $0x10] sm:$0xff]  ;;  %v1020_v42 = vld [vmem:[#allocation2 + $0x18] sm:$0xff] }
  0x21   : > { %942 = vrot.lane.b32.xlu0 %v359_v1, %s1672_s17 }
  0x22   : > { %940 = vrot.lane.b32.xlu1 %v358_v2, %s1672_s17 }
  0x8b   : > { %v560_v3 = vpop.permute.xlu0 %559 }
  0x8c   : > { %1459 = vmatpush3.xpose.msk.msra.mxu1 %vm349_vm0, %v560_v3  ;;  %v752_v4 = vpop.permute.xlu1 %751 }
  0x8d   : > { %1468 = vmatprep.subr.mxu1 %v1668_v0 }
  0x8f   : > { %v558_v5 = vpop.permute.xlu0 %557 }
  0x90   : > { %1461 = vmatmul.mubr.msk.f32.vlgmr.msra.gmra.mxu1 %vm349_vm0, %v558_v5  ;;  %v750_v6 = vpop.permute.xlu1 %749 }
  0x91   : > { %1469 = vmatpush3.xpose.msk.msra.mxu1 %vm349_vm0, %v752_v4  ;;  %1470 = vmatprep.mubr.msk.f32.mxu1 %vm1669_vm1, %v1668_v0 }
  0x92   : > { %1478 = vmatprep.subr.mxu1 %v1668_v0 }
  0x93   : > { %v943_v7 = vpop.permute.xlu0 %942 }
  0x94   : > { %1471 = vmatmul.mubr.msk.f32.vlgmr.msra.gmra.mxu1 %vm349_vm0, %v750_v6  ;;  %v941_v8 = vpop.permute.xlu1 %940 }
  0x95   : > { %1479 = vmatpush3.xpose.msk.msra.mxu1 %vm349_vm0, %v943_v7  ;;  %1480 = vmatprep.mubr.msk.f32.mxu1 %vm1669_vm1, %v1668_v0 }
  0x96   : > { %1488 = vmatprep.subr.mxu1 %v1668_v0 }
  0x98   : > { %1481 = vmatmul.mubr.msk.f32.vlgmr.msra.gmra.mxu1 %vm349_vm0, %v941_v8 }
  0x99   : > { %1496 = vmatprep.mubr.msk.f32.mxu1 %vm1669_vm1, %v1668_v0 }
  0xdc   : > { %v445_v12 = vpop.f32.mrf.mxu0 }
  0xdd   : > { %v449_v14 = vsel %vm371_vm2, %v445_v12, -1e+30 }
  0xde   : > { %v451_v15 = vsel %vm349_vm0, %v449_v14, -inf  ;;  %v1452_v16 = vpop.f32.mrf.mxu0 }
  0xdf   : > { %452 = vmax.xlane.f32.xlu0 %v451_v15  ;;  %v654_v16 = vld [vmem:[#allocation3 + $0x8] sm:$0xff] }
 0x150   : > { %v631_v18 = vpop.f32.mrf.mxu1 }
 0x151   : > { %v635_v19 = vsel %vm371_vm2, %v631_v18, -1e+30 }
 0x152   : > { %v1462_v20 = vpop.f32.mrf.mxu1  ;;  %v638_v21 = vsel %vm349_vm0, %v635_v19, -inf }
 0x153   : > { %639 = vmax.xlane.f32.xlu1 %v638_v21 }
 0x154   : > { %v823_v22 = vpop.f32.mrf.mxu1 }
 0x155   : > { %v827_v23 = vsel %vm371_vm2, %v823_v22, -1e+30 }
 0x156   : > { %v1472_v24 = vpop.f32.mrf.mxu1  ;;  %v830_v25 = vsel %vm349_vm0, %v827_v23, -inf }
 0x157   : > { %831 = vmax.xlane.f32.xlu0 %v830_v25 }
 0x158   : > { %v1014_v26 = vpop.f32.mrf.mxu1 }
 0x159   : > { %v1018_v27 = vsel %vm371_vm2, %v1014_v26, -1e+30 }
 0x15a   : > { %v1482_v28 = vpop.f32.mrf.mxu1  ;;  %v1021_v29 = vsel %vm349_vm0, %v1018_v27, -inf }
 0x15b   : > { %1022 = vmax.xlane.f32.xlu0 %v1021_v29  ;;  %v466_v28 = vld [vmem:[#allocation3] sm:$0xff] }
 0x168   : > { %v453_v31 = vpop.xlane.xlu0 %452 }
 0x169   : > { %v1839_v32 = vmax.f32 %v1836_v30, %v453_v31 }
 0x16b   : > { %v455_v33 = vsub.f32 %v1836_v30, %v1839_v32  ;;  %556 = vst.msk [vmem:[#allocation2] sm:$0xff] %vm340_vm3, %v1839_v32  ;;  %460 = vperm.xlu1 %1564, %v1839_v32  }
 0x16d   : > { %v456_v15 = vmul.f32 1.442695, %v455_v33 }
 0x1dc   : > { %v640_v36 = vpop.xlane.xlu1 %639 }
 0x1dd   : > { %v641_v37 = vmax.f32 %v637_v35, %v640_v36 }
 0x1df   : > { %v642_v39 = vsub.f32 %v637_v35, %v641_v37  ;;  %748 = vst.msk [vmem:[#allocation2 + $0x8] sm:$0xff] %vm340_vm3, %v641_v37  ;;  %647 = vperm.xlu0 %1565, %v641_v37  }
 0x1e0   : > { %v832_v40 = vpop.xlane.xlu0 %831 }
 0x1e1   : > { %v833_v41 = vmax.f32 %v829_v38, %v832_v40  ;;  %v643_v6 = vmul.f32 1.442695, %v642_v39 }
 0x1e3   : > { %v834_v43 = vsub.f32 %v829_v38, %v833_v41  ;;  %939 = vst.msk [vmem:[#allocation2 + $0x10] sm:$0xff] %vm340_vm3, %v833_v41  ;;  %839 = vperm.xlu1 %1564, %v833_v41   ;;  %v739_v41 = vld [vmem:[#allocation4 + $0x8] sm:$0xff] }
 0x1e4   : > { %v1023_v44 = vpop.xlane.xlu0 %1022 }
 0x1e5   : > { %v1024_v45 = vmax.f32 %v1020_v42, %v1023_v44  ;;  %v835_v7 = vmul.f32 1.442695, %v834_v43 }
 0x1e6   : > { %v461_v46 = vpop.permute.xlu1 %460 }
 0x1e7   : > { %v1025_v47 = vsub.f32 %v1020_v42, %v1024_v45  ;;  %1130 = vst.msk [vmem:[#allocation2 + $0x18] sm:$0xff] %vm340_vm3, %v1024_v45  ;;  %v463_v48 = vsub.f32 %v449_v14, %v461_v46  ;;  %1030 = vperm.xlu1 %1564, %v1024_v45   ;;  %v930_v45 = vld [vmem:[#allocation4 + $0x10] sm:$0xff] }
 0x1e9   : > { %v464_v49 = vmul.f32 1.442695, %v463_v48  ;;  %v1026_v9 = vmul.f32 1.442695, %v1025_v47 }
 0x1eb   : > { %662 = vrot.lane.b32.xlu1 %v360_v34, %s1670_s15  ;;  %1566 = vpow2.f32 %v464_v49  ;;  %s1676_s15 = smov 16  }
 0x1ef   : > { %853 = vrot.lane.b32.xlu1 %v360_v34, %s1671_s16  ;;  %s1677_s16 = smov 24  }
 0x1f3   : > { %1044 = vrot.lane.b32.xlu1 %v360_v34, %s1672_s17  ;;  %s304_s17 = sand.u32 1, %s1650_s19  }
 0x1f4   : > { %s1405_s24 = sshll.u32 %s304_s17, 3  ;;  %s1282_s12 = scalar_lea.sflag [#allocation6], %s304_s17 }
 0x1f5   : > { %s306_s7 = scalar_lea.vmem [#allocation5], %s1405_s24 }
 0x1f6   : > { %s1296_s8 = sshll.u32 %s306_s7, 4  ;;  %s1297_s8 = int_to_ptr.vmem [resolvable:$true] %s1296_s8 }
 0x1f7   : > { %s1590_s13 = scalar_lea.vmem %s1297_s8, 128 }
 0x1f8   : > { %v1567_v50 = vpop.eup %1566  ;;  %p1591_p12 = scmp.ne.s32.totalorder %s1297_s8, %s1590_s13 }
 0x1f9   : > { %1456 = vmatmul.mubr.msk.f32.vlgmr.msra.gmra.mxu0 %vm349_vm0, %v1567_v50  ;;  %v468_v8 = vsel %vm349_vm0, %v1567_v50, 0.0  ;;  %v1121_v50 = vld [vmem:[#allocation4 + $0x18] sm:$0xff] }
 0x1fa   : > { %1465 = vmatprep.mubr.msk.f32.mxu0 %vm1669_vm1, %v1668_v0  ;;  %p1592_p13 = pnand %p1591_p12, %p1749_p4 }
 0x1fc   : > { %p1593_p0 = pneg %p1592_p13 }
 0x25a   : > { %v648_v51 = vpop.permute.xlu0 %647 }
 0x25b   : > { %v650_v52 = vsub.f32 %v635_v19, %v648_v51  ;;  %v846_v19 = vld [vmem:[#allocation3 + $0x10] sm:$0xff] }
 0x25d   : > { %v651_v53 = vmul.f32 1.442695, %v650_v52 }
 0x25e   : > { %v840_v54 = vpop.permute.xlu1 %839 }
 0x25f   : > { %1568 = vpow2.f32 %v651_v53  ;;  %v842_v55 = vsub.f32 %v827_v23, %v840_v54  ;;  %v1037_v23 = vld [vmem:[#allocation3 + $0x18] sm:$0xff] }
 0x261   : > { %v843_v56 = vmul.f32 1.442695, %v842_v55 }
 0x262   : > { %v1031_v57 = vpop.permute.xlu1 %1030 }
 0x263   : > { %1570 = vpow2.f32 %v843_v56  ;;  %v1033_v58 = vsub.f32 %v1018_v27, %v1031_v57 }
 0x265   : > { %v1034_v59 = vmul.f32 1.442695, %v1033_v58 }
 0x266   : > { %v663_v60 = vpop.permute.xlu1 %662 }
 0x267   : > { %1572 = vpow2.f32 %v1034_v59  ;;  %1464 = vmatpush3.msra.mxu0 %v663_v60  ;;  %v1198_v59 = vld [vmem:[%s1956_s3 + $0x18] sm:$0xff]  ;;  %v1197_v60 = vld [vmem:[%s1956_s3 + $0x10] sm:$0xff] }
 0x268   : > { %1473 = vmatprep.subr.mxu0 %v1668_v0  ;;  %1574 = vpow2.f32 %v643_v6  ;;  %1489 = vmatpush3.msra.mxu1 %v1198_v59  ;;  %v547_v6 = vld [vmem:[#allocation4] sm:$0xff] }
 0x269   : > { %1576 = vpow2.f32 %v835_v7  ;;  %1490 = vmatprep.subr.mxu1 %v1668_v0 }
 0x26a   : > { %v854_v61 = vpop.permute.xlu1 %853  ;;  %1578 = vpow2.f32 %v1026_v9  ;;  %1491 = vmatpush3.msra.mxu1 %v1197_v60 }
 0x26b   : > { %1580 = vpow2.f32 %v456_v15  ;;  %1492 = vmatprep.subr.mxu1 %v1668_v0 }
 0x26c   : > { %v1569_v62 = vpop.eup %1568 }
 0x26d   : > { %1466 = vmatmul.mubr.msk.f32.vlgmr.msra.gmra.mxu0 %vm349_vm0, %v1569_v62  ;;  %v656_v63 = vsel %vm349_vm0, %v1569_v62, 0.0  ;;  %v1195_v62 = vld [vmem:[%s1956_s3] sm:$0xff] }
 0x26e   : > { %657 = vadd.xlane.f32.xlu1 %v656_v63  ;;  %1474 = vmatpush3.msra.mxu0 %v854_v61  ;;  %v1045_v1 = vpop.permute.xlu1 %1044  ;;  %v1196_v61 = vld [vmem:[%s1956_s3 + $0x8] sm:$0xff] }
 0x26f   : > { %1475 = vmatprep.mubr.msk.f32.mxu0 %vm1669_vm1, %v1668_v0  ;;  %1483 = vmatprep.subr.mxu0 %v1668_v0 }
 0x270   : > { %v1571_v2 = vpop.eup %1570  ;;  %1493 = vmatpush3.msra.mxu1 %v1196_v61 }
 0x271   : > { %1476 = vmatmul.mubr.msk.f32.vlgmr.msra.gmra.mxu0 %vm349_vm0, %v1571_v2  ;;  %v848_v3 = vsel %vm349_vm0, %v1571_v2, 0.0  ;;  %1494 = vmatprep.subr.mxu1 %v1668_v0 }
 0x272   : > { %849 = vadd.xlane.f32.xlu0 %v848_v3  ;;  %1484 = vmatpush3.msra.mxu0 %v1045_v1 }
 0x273   : > { %1485 = vmatprep.mubr.msk.f32.mxu0 %vm1669_vm1, %v1668_v0  ;;  %1495 = vmatpush3.msra.mxu1 %v1195_v62 }
 0x274   : > { %v1573_v4 = vpop.eup %1572 }
 0x275   : > { %1486 = vmatmul.mubr.msk.f32.vlgmr.msra.gmra.mxu0 %vm349_vm0, %v1573_v4  ;;  %v1039_v5 = vsel %vm349_vm0, %v1573_v4, 0.0  ;;  %v1575_v10 = vpop.eup %1574 }
 0x276   : > { %1040 = vadd.xlane.f32.xlu1 %v1039_v5  ;;  %v1577_v11 = vpop.eup %1576  ;;  %v655_v17 = vmul.f32 %v1575_v10, %v654_v16 }
 0x277   : > { %v1579_v12 = vpop.eup %1578  ;;  %v847_v21 = vmul.f32 %v1577_v11, %v846_v19 }
 0x278   : > { %v1038_v25 = vmul.f32 %v1579_v12, %v1037_v23  ;;  %v1581_v26 = vpop.eup %1580 }
 0x279   : > { %v467_v31 = vmul.f32 %v1581_v26, %v466_v28 }
 0x27a   : > { %469 = vadd.xlane.f32.xlu1 %v468_v8 }
 0x288   : > { %742 = vperm.xlu0 %1565, %v1575_v10  }
 0x28b   : > { %933 = vperm.xlu1 %1564, %v1577_v11  }
 0x28f   : > { %1124 = vperm.xlu1 %1564, %v1579_v12  }
 0x2b9   : > { %v1873_v13 = vpop.f32.mrf.mxu0 }
 0x2bb   : > { %v1457_v14 = vpop.f32.mrf.mxu0 }
 0x2f7   : > { %v658_v18 = vpop.xlane.xlu1 %657 }
 0x2f8   : > { %v659_v20 = vadd.f32 %v658_v18, %v655_v17 }
 0x2fa   : > { %660 = vst.msk [vmem:[#allocation3 + $0x8] sm:$0xff] %vm340_vm3, %v659_v20 }
 0x2fb   : > { %v850_v22 = vpop.xlane.xlu0 %849 }
 0x2fc   : > { %v851_v24 = vadd.f32 %v850_v22, %v847_v21 }
 0x2fe   : > { %852 = vst.msk [vmem:[#allocation3 + $0x10] sm:$0xff] %vm340_vm3, %v851_v24 }
 0x2ff   : > { %v1041_v27 = vpop.xlane.xlu1 %1040 }
 0x300   : > { %v1042_v29 = vadd.f32 %v1041_v27, %v1038_v25 }
 0x301   : > { %v1145_v30 = vld [vmem:[#allocation3 + $0x8] sm:$0xff] }
 0x302   : > { %1043 = vst.msk [vmem:[#allocation3 + $0x18] sm:$0xff] %vm340_vm3, %v1042_v29  ;;  %1582 = vrcp.f32 %v1145_v30 }
 0x303   : > { %v470_v32 = vpop.xlane.xlu1 %469  ;;  %v743_v42 = vpop.permute.xlu0 %742 }
 0x304   : > { %v471_v33 = vadd.f32 %v470_v32, %v467_v31  ;;  %v745_v44 = vmul.f32 %v743_v42, %v739_v41 }
 0x305   : > { %v1156_v34 = vld [vmem:[#allocation3 + $0x10] sm:$0xff] }
 0x306   : > { %473 = vst.msk [vmem:[#allocation3] sm:$0xff] %vm340_vm3, %v471_v33  ;;  %1584 = vrcp.f32 %v1156_v34 }
 0x307   : > { %v934_v43 = vpop.permute.xlu1 %933 }
 0x308   : > { %v936_v49 = vmul.f32 %v934_v43, %v930_v45 }
 0x309   : > { %v1167_v35 = vld [vmem:[#allocation3 + $0x18] sm:$0xff] }
 0x30a   : > { %1586 = vrcp.f32 %v1167_v35 }
 0x30b   : > { %v1125_v51 = vpop.permute.xlu1 %1124 }
 0x30c   : > { %v1127_v55 = vmul.f32 %v1125_v51, %v1121_v50 }
 0x30d   : > { %v1135_v36 = vld [vmem:[#allocation3] sm:$0xff] }
 0x30e   : > { %1588 = vrcp.f32 %v1135_v36 }
 0x30f   : > { %v1583_v37 = vpop.eup %1582 }
 0x310   : > { %1151 = vperm.xlu0 %1565, %v1583_v37  }
 0x313   : > { %v1585_v38 = vpop.eup %1584 }
 0x314   : > { %1162 = vperm.xlu1 %1564, %v1585_v38  }
 0x317   : > { %v1587_v39 = vpop.eup %1586 }
 0x318   : > { %1173 = vperm.xlu0 %1565, %v1587_v39   ;;  %550 = vperm.xlu1 %1564, %v1581_v26  }
 0x31b   : > { %v1589_v40 = vpop.eup %1588 }
 0x31c   : > { %1140 = vperm.xlu0 %1565, %v1589_v40  }
 0x32d   : > { %v734_v46 = vpop.f32.mrf.mxu0 }
 0x32e   : > { %v746_v47 = vadd.f32 %v745_v44, %v734_v46 }
 0x32f   : > { %v1467_v48 = vpop.f32.mrf.mxu0 }
 0x330   : > { %747 = vst.msk [vmem:[#allocation4 + $0x8] sm:$0xff] %vm349_vm0, %v746_v47 }
 0x331   : > { %v925_v52 = vpop.f32.mrf.mxu0 }
 0x332   : > { %v937_v53 = vadd.f32 %v936_v49, %v925_v52 }
 0x333   : > { %v1477_v54 = vpop.f32.mrf.mxu0 }
 0x334   : > { %938 = vst.msk [vmem:[#allocation4 + $0x10] sm:$0xff] %vm349_vm0, %v937_v53 }
 0x335   : > { %v1116_v56 = vpop.f32.mrf.mxu0 }
 0x336   : > { %v1128_v57 = vadd.f32 %v1127_v55, %v1116_v56 }
 0x337   : > { %v1487_v58 = vpop.f32.mrf.mxu0  ;;  %v1148_v1 = vld [vmem:[#allocation4 + $0x8] sm:$0xff] }
 0x338   : > { %1129 = vst.msk [vmem:[#allocation4 + $0x18] sm:$0xff] %vm349_vm0, %v1128_v57 }
 0x33b   : > { %v1159_v4 = vld [vmem:[#allocation4 + $0x10] sm:$0xff] }
 0x33f   : > { %v1170_v9 = vld [vmem:[#allocation4 + $0x18] sm:$0xff] }
 0x38b   : > { %v1152_v63 = vpop.permute.xlu0 %1151 }
 0x38c   : > { %v1154_v2 = vmul.f32 %v1152_v63, %v1148_v1 }
 0x38e   : > { %1178 = vrot.lane.b32.xlu1 %v1154_v2, %s1675_s14  ;;  %s1594_s14 = sshll.u32 %s1678_s21, 4  ;;  %s1595_s14 = int_to_ptr.vmem [resolvable:$false] %s1594_s14 }
 0x38f   : > { %v1163_v3 = vpop.permute.xlu1 %1162  ;;  %p1597_p1 = scmp.lt.s32.totalorder %s1297_s8, %s1595_s14 }
 0x390   : > { %v1165_v5 = vmul.f32 %v1163_v3, %v1159_v4 }
 0x392   : > { %1182 = vrot.lane.b32.xlu0 %v1165_v5, %s1676_s15  ;;  %s1596_s15 = scalar_lea.vmem %s1595_s14, 256 }
 0x393   : > { %v551_v7 = vpop.permute.xlu1 %550  ;;  %v1174_v8 = vpop.permute.xlu0 %1173  ;;  %p1598_p2 = scmp.lt.s32.totalorder %s1596_s15, %s1590_s13 }
 0x394   : > { %v553_v0 = vmul.f32 %v551_v7, %v547_v6  ;;  %v1176_v10 = vmul.f32 %v1174_v8, %v1170_v9 }
 0x395   : > { %p1599_p3 = por %p1598_p2, %p1597_p1 }
 0x396   : > { %v554_v11 = vadd.f32 %v553_v0, %v1873_v13  ;;  %1186 = vrot.lane.b32.xlu1 %v1176_v10, %s1677_s16  ;;  %v1421_v13 = vld [vmem:[%s1957_s4] ss:$0 sm:$0xff] }
 0x397   : > { %v1141_v12 = vpop.permute.xlu0 %1140  ;;  %p1600_p5 = pnand %p1599_p3, %p1593_p0 }
 0x398   : > { %555 = vst.msk [vmem:[#allocation4] sm:$0xff] %vm349_vm0, %v554_v11 }
 0x39f   : > { %v1137_v14 = vld [vmem:[#allocation4] sm:$0xff] }
 0x3a0   : > { %v1143_v16 = vmul.f32 %v1141_v12, %v1137_v14 }
 0x400   : > { %v1179_v15 = vpop.permute.xlu1 %1178 }
 0x401   : > { %v1190_v18 = vsel %vm349_vm0, %v1143_v16, %v1179_v15 }
 0x404   : > { %v1183_v17 = vpop.permute.xlu0 %1182 }
 0x405   : > { %v1192_v19 = vsel %vm1191_vm4, %v1190_v18, %v1183_v17 }
 0x408   : > { %v1187_v20 = vpop.permute.xlu1 %1186 }
 0x409   : > { %v1194_v21 = vsel %vm1193_vm5, %v1192_v19, %v1187_v20 }
 0x40a   : > { %1497 = vmatmul.mubr.msk.f32.vlgmr.msra.gmra.mxu1 %vm1206_vm6, %v1194_v21 }
 0x4ca   : > { %v1276_v22 = vpop.f32.mrf.mxu1 }
 0x4cb   : > { %v1277_v23 = vadd.f32 %v1421_v13, %v1276_v22 }
 0x4cc   : > { %v1498_v24 = vpop.f32.mrf.mxu1 }
 0x4cd   : > { %1280 = vst.msk [vmem:[%s306_s7] sm:$0xff] %vm1206_vm6, %v1277_v23 }
 0x4ce   : > { %1603 = shalt.err (!%p1600_p5)
}
 0x4cf   : > { %s1604_s16 = scalar_lea.hbm %s1912_s11, 128  ;;  %s1608_s25 = scalar_lea.hbm %s1958_s5, 256 }
 0x4d0   : > { %p1605_p6 = scmp.ne.s32.totalorder %s1912_s11, %s1604_s16  ;;  %p1609_p10 = scmp.lt.s32.totalorder %s1912_s11, %s1958_s5 }
 0x4d1   : > { %p1610_p11 = scmp.lt.s32.totalorder %s1608_s25, %s1604_s16 }
 0x4d2   : > { %p1606_p7 = pnand %p1605_p6, %p1749_p4 }
 0x4d3   : > { %p1611_p12 = por %p1610_p11, %p1609_p10 }
 0x4d4   : > { %p1607_p9 = pneg %p1606_p7 }
 0x4d6   : > { %p1612_p13 = pnand %p1611_p12, %p1607_p9 }
 0x4d8   : > { %1615 = shalt.err (!%p1612_p13)
}
 0x4d9   : > { %1499 = dma.vmem_to_hbm [thread:$0]  (%p1749_p4), %s1297_s8, 128, %s1912_s11, %s1282_s12  }
 0x4da PF: > { %p1505_p0 = scmp.ge.s32.totalorder %s1666_s23, 2  ;;  %s1308_s7 = sand.u32 1, %s1646_s18  }
 0x4db   : > { %s1309_s9 = scalar_lea.sflag [#allocation6], %s1308_s7 }
 0x4dc   : > { %p1502_p1 = pnand %p1505_p0, %p1756_p8 }
 0x4de   : > { %p1503_p2 = pneg %p1502_p1 }
 0x4e0   : > { %1641 = dma.done.wait (%p1503_p2), %s1309_s9, 128  }
 0x4e1   : > { %1643 = vsyncadd (%p1503_p2), %s1309_s9, 4294967168  ;;  %s18_s23 = sadd.s32 1, %s1666_s23   ;;  %s1961_s18 = smov %s1650_s19 }
 0x4e2   : > { %p15_p3 = scmp.ge.s32.totalorder %s18_s23, 4   ;;  %s1962_s19 = smov %s1654_s20 }
 0x4e3   : > { %s1963_s20 = smov %s1762_s6  ;;  %s1964_s21 = smov %s1662_s22 }
 0x4e4   : > { %s1965_s22 = smov %s1967_s26  ;;  %17 = sbr.rel (!%p15_p3) target bundleno = 4 (0x4), region = 108 }
 0x4e9   :  { %1314 = vsyncpa [#allocation6], 1 }
 0x4ea   :  { %1316 = vsyncpa [#allocation6 + $0x1], 1 }

</bundles_post_ra>
